<compile_context>
chip_gen: v6e
topology: v6e:2x2x1
jax: 0.10.0
libtpu: 0.0.40
codegen_flags: <defaults>
</compile_context>

<pallas_src>
import functools

import jax
import jax.numpy as jnp
from jax.experimental import pallas as pl
from jax.experimental.pallas import tpu as pltpu

_LN_EPS = 1e-12        # matches the from-scratch LayerNorm(eps=1e-12)
_MASK_FILL = -10000.0  # same fill value the reference masked_fill uses

# Resident (constant-index) operands are single-buffered when supported, halving
# their VMEM footprint.  Set by probe_single_buffered_weights(); None = default.
_RESIDENT_PIPELINE_MODE = None


def probe_single_buffered_weights():
    """Enable pl.Buffered(1) for resident operands if this JAX/libtpu supports it."""
    global _RESIDENT_PIPELINE_MODE
    try:
        def copy_kernel(x_ref, o_ref):
            o_ref[...] = x_ref[...]

        x = jnp.ones((8, 128), jnp.float32)
        out = pl.pallas_call(
            copy_kernel,
            out_shape=jax.ShapeDtypeStruct((16, 128), jnp.float32),
            grid=(2,),
            in_specs=[pl.BlockSpec((8, 128), lambda i: (0, 0),
                                   pipeline_mode=pl.Buffered(1))],
            out_specs=pl.BlockSpec((8, 128), lambda i: (i, 0)),
        )(x)
        out = jax.block_until_ready(out)
        if bool(jnp.all(out == 1.0)):
            _RESIDENT_PIPELINE_MODE = pl.Buffered(1)
    except Exception:
        _RESIDENT_PIPELINE_MODE = None


def _resident_spec(shape):
    """BlockSpec for an operand whose block index never changes across the grid."""
    zeros = (0,) * len(shape)
    if _RESIDENT_PIPELINE_MODE is None:
        return pl.BlockSpec(shape, lambda *_: zeros)
    return pl.BlockSpec(shape, lambda *_: zeros,
                        pipeline_mode=_RESIDENT_PIPELINE_MODE)


def _vmem_limit_bytes():
    """Per-generation VMEM budget: ~75% of physical, capped at 96 MiB."""
    cap = None
    try:
        cap = getattr(pltpu.get_tpu_info(), "vmem_capacity_bytes", None)
    except Exception:
        cap = None
    if not cap:
        return 48 * 1024 * 1024  # safe on every generation (incl. v7x's 64 MiB)
    return int(min(96 * 1024 * 1024, cap * 3 // 4))


# ----------------------------- kernel helpers -----------------------------

def _layernorm(y, gamma, beta, eps):
    # f32 LayerNorm over the last dim (biased variance); gamma/beta broadcast (1, D).
    mu = jnp.mean(y, axis=-1, keepdims=True)
    var = jnp.mean((y - mu) ** 2, axis=-1, keepdims=True)
    return gamma * (y - mu) * jax.lax.rsqrt(var + eps) + beta


# ----------------------------- Pallas kernels -----------------------------

def _attn_block_kernel(*refs, n_head, eps, mask_mode, self_attn, fused_qkv):
    it = iter(refs)
    bias_ref = next(it) if mask_mode == "dense" else None
    xq_ref = next(it)                       # (1, tq, D) f32  q rows (residual if self)
    xkv_ref = next(it)                      # (1, Sk, D) f32  kv rows
    res_ref = xq_ref if self_attn else next(it)
    wqkv_ref = next(it)                     # (D, 3D) bf16 (Q columns pre-scaled)
    bqkv_ref = next(it)                     # (1, 3D) f32
    wo_ref = next(it)                       # (D, D) bf16
    bo_ref = next(it)                       # (1, D) f32
    g_ref = next(it)                        # (1, D) f32
    b_ref = next(it)                        # (1, D) f32
    o_ref = next(it)                        # (1, tq, D) f32
    ctx_ref = next(it)                      # VMEM scratch (tq, D) f32

    xq = xq_ref[0]
    xkv = xkv_ref[0]
    res = res_ref[0]

    tq, D = xq.shape
    sk = xkv.shape[0]
    dt = D // n_head

    if fused_qkv:
        # Self-attention with the whole Sq in one tile: q rows == kv rows, so the
        # Q/K/V projections collapse into a single wide (Sk, D) @ (D, 3D) MXU matmul.
        qkv = jnp.dot(xkv.astype(jnp.bfloat16), wqkv_ref[...],
                      preferred_element_type=jnp.float32) + bqkv_ref[...]
        qkv16 = qkv.astype(jnp.bfloat16)
        q16 = qkv16[:, :D]
        k16 = qkv16[:, D:2 * D]
        v16 = qkv16[:, 2 * D:]
    else:
        q = jnp.dot(xq.astype(jnp.bfloat16), wqkv_ref[:, :D],
                    preferred_element_type=jnp.float32) + bqkv_ref[:, :D]
        kv = jnp.dot(xkv.astype(jnp.bfloat16), wqkv_ref[:, D:],
                     preferred_element_type=jnp.float32) + bqkv_ref[:, D:]
        q16 = q.astype(jnp.bfloat16)
        kv16 = kv.astype(jnp.bfloat16)
        k16 = kv16[:, :D]
        v16 = kv16[:, D:]

    if mask_mode == "causal":
        # Causal mask generated in-kernel: no HBM mask traffic at all.
        q0 = pl.program_id(1) * tq
        rows = jax.lax.broadcasted_iota(jnp.int32, (tq, sk), 0) + q0
        cols = jax.lax.broadcasted_iota(jnp.int32, (tq, sk), 1)
        disallowed = cols > rows
    elif mask_mode == "dense":
        add_bias = bias_ref[0]              # (tq, sk) additive f32 bias (0 / -10000)

    # Per-head attention; each head's context goes straight into its lane slice of the
    # VMEM scratch (no list + concatenate -> bounded live ranges, no lane repacking).
    # TODO(synk): flash-style Sk tiling for long sequences instead of the full (tq, Sk)
    # score tile; head_dim should be a multiple of 128 at production shapes.
    for h in range(n_head):
        lo, hi = h * dt, (h + 1) * dt
        s = jax.lax.dot_general(q16[:, lo:hi], k16[:, lo:hi],
                                (((1,), (1,)), ((), ())),
                                preferred_element_type=jnp.float32)
        if mask_mode == "causal":
            s = jnp.where(disallowed, _MASK_FILL, s)
        elif mask_mode == "dense":
            s = s + add_bias
        m = jnp.max(s, axis=-1, keepdims=True)
        p = jnp.exp(s - m)                                    # f32 EUP
        l = jnp.sum(p, axis=-1, keepdims=True)
        pv = jnp.dot(p.astype(jnp.bfloat16), v16[:, lo:hi],
                     preferred_element_type=jnp.float32)
        # Normalize after the PV matmul: (tq, dt) multiply instead of (tq, Sk).
        ctx_ref[:, lo:hi] = pv * pl.reciprocal(l, approx=True)

    # Output projection + residual add + LayerNorm epilogue (f32), all fused.
    out = jnp.dot(ctx_ref[...].astype(jnp.bfloat16), wo_ref[...],
                  preferred_element_type=jnp.float32) + bo_ref[...]
    o_ref[0] = _layernorm(out + res, g_ref[...], b_ref[...], eps)


def _ffn_block_kernel(x_ref, w1_ref, b1_ref, w2_ref, b2_ref, g_ref, b_ref, o_ref, *, eps):
    x = x_ref[...]                           # (tm, D) f32; also the residual
    h = jnp.dot(x.astype(jnp.bfloat16), w1_ref[...],
                preferred_element_type=jnp.float32) + b1_ref[...]
    h = jnp.maximum(h, 0.0)                  # ReLU in f32
    y = jnp.dot(h.astype(jnp.bfloat16), w2_ref[...],
                preferred_element_type=jnp.float32) + b2_ref[...]
    o_ref[...] = _layernorm(y + x, g_ref[...], b_ref[...], eps)


# ----------------------------- wrappers -----------------------------

def _pick_q_tile(sq, sk, score_budget_bytes=8 * 1024 * 1024):
    """Largest Sq row-tile whose f32 score block fits the budget (multiple of 8)."""
    if sq * sk * 4 <= score_budget_bytes:
        return sq
    tq = (score_budget_bytes // (sk * 4)) // 8 * 8
    return int(max(8, min(tq, sq)))


def _attention_block(q_in, kv_in, residual, p, ln_g, ln_b, n_head, *,
                     mask=None, mask_mode="none", self_attn=False):
    # q_in: (B, Sq, D); kv_in: (B, Sk, D); residual: (B, Sq, D) (ignored if self_attn)
    B, Sq, D = q_in.shape
    Sk = kv_in.shape[1]

    if mask_mode == "dense":
        assert mask is not None
        tq = Sq   # keep mask blocks at full array dims; TODO(synk): tile dense masks
    else:
        tq = _pick_q_tile(Sq, Sk)
    n_q = int(pl.cdiv(Sq, tq))
    fused_qkv = self_attn and tq == Sq

    kernel = functools.partial(_attn_block_kernel, n_head=n_head, eps=_LN_EPS,
                               mask_mode=mask_mode, self_attn=self_attn,
                               fused_qkv=fused_qkv)

    in_specs, args = [], []
    if mask_mode == "dense":
        # Pre-baked additive f32 bias (0 where attended, -10000 where masked):
        # removes the per-head compare/select, matches masked_fill(-10000) semantics.
        bias = jnp.where(mask[:, 0] == 0, _MASK_FILL, 0.0).astype(jnp.float32)
        in_specs.append(pl.BlockSpec((1, tq, Sk), lambda b, qi: (b, qi, 0)))
        args.append(bias)
    in_specs.append(pl.BlockSpec((1, tq, D), lambda b, qi: (b, qi, 0)))      # q rows
    args.append(q_in)
    in_specs.append(pl.BlockSpec((1, Sk, D), lambda b, qi: (b, 0, 0)))       # kv rows
    args.append(kv_in)
    if not self_attn:
        in_specs.append(pl.BlockSpec((1, tq, D), lambda b, qi: (b, qi, 0)))  # residual
        args.append(residual)
    in_specs += [
        _resident_spec((D, 3 * D)),   # wqkv (bf16, Q columns pre-scaled by 1/sqrt(dt))
        _resident_spec((1, 3 * D)),   # bqkv
        _resident_spec((D, D)),       # wo
        _resident_spec((1, D)),       # bo
        _resident_spec((1, D)),       # LN gamma
        _resident_spec((1, D)),       # LN beta
    ]
    args += [p["wqkv"], p["bqkv"], p["wo"], p["bo"], ln_g, ln_b]

    proj_flops = (2 * Sk * D * 3 * D) if fused_qkv else (2 * tq * D * D + 2 * Sk * D * 2 * D)
    per_tile = proj_flops + 4 * tq * Sk * D + 2 * tq * D * D
    act_bytes = 4 * (B * Sq * D                              # q rows
                     + B * n_q * Sk * D                      # kv rows per q tile
                     + (0 if self_attn else B * Sq * D)      # residual
                     + B * Sq * D)                           # output
    bytes_accessed = (act_bytes
                      + (4 * B * Sq * Sk if mask_mode == "dense" else 0)
                      + 2 * (p["wqkv"].size + p["wo"].size)
                      + 4 * (p["bqkv"].size + p["bo"].size + ln_g.size + ln_b.size))

    return pl.pallas_call(
        kernel,
        out_shape=jax.ShapeDtypeStruct((B, Sq, D), jnp.float32),
        grid=(B, n_q),
        in_specs=in_specs,
        out_specs=pl.BlockSpec((1, tq, D), lambda b, qi: (b, qi, 0)),
        scratch_shapes=[pltpu.VMEM((tq, D), jnp.float32)],
        compiler_params=pltpu.CompilerParams(
            dimension_semantics=("parallel", "parallel"),
            vmem_limit_bytes=_vmem_limit_bytes()),
        cost_estimate=pl.CostEstimate(
            flops=int(B * n_q * per_tile),
            transcendentals=int(B * n_q * tq * Sk * n_head),
            bytes_accessed=int(bytes_accessed)),
    )(*args)


def _ffn_block(x, w1, b1, w2, b2, ln_g, ln_b):
    B, S, D = x.shape
    N = B * S
    F = w1.shape[1]
    # Row tile: stream 512 rows when N is large (>=85% of HBM roofline), full N when
    # small; cdiv grid + Pallas edge masking handles non-divisible N (no giant block).
    tm = N if N <= 512 else 512
    grid = (int(pl.cdiv(N, tm)),)
    x2d = x.reshape(N, D)

    kernel = functools.partial(_ffn_block_kernel, eps=_LN_EPS)
    out = pl.pallas_call(
        kernel,
        out_shape=jax.ShapeDtypeStruct((N, D), jnp.float32),
        grid=grid,
        in_specs=[
            pl.BlockSpec((tm, D), lambda i: (i, 0)),   # x (also residual)
            _resident_spec((D, F)),                    # w1
            _resident_spec((1, F)),                    # b1
            _resident_spec((F, D)),                    # w2
            _resident_spec((1, D)),                    # b2
            _resident_spec((1, D)),                    # LN gamma
            _resident_spec((1, D)),                    # LN beta
        ],
        out_specs=pl.BlockSpec((tm, D), lambda i: (i, 0)),
        compiler_params=pltpu.CompilerParams(
            dimension_semantics=("parallel",),
            vmem_limit_bytes=_vmem_limit_bytes()),
        cost_estimate=pl.CostEstimate(
            flops=int(4 * N * D * F),
            transcendentals=0,
            bytes_accessed=int(8 * N * D + 2 * (w1.size + w2.size)
                               + 4 * (b1.size + b2.size + ln_g.size + ln_b.size))),
    )(x2d, w1, b1, w2, b2, ln_g, ln_b)
    return out.reshape(B, S, D)


def decoder_layer(dec, enc, trg_mask, src_mask, params, n_head,
                  trg_mask_mode="dense", src_mask_mode="dense"):
    # mask modes: "causal" (generated in-kernel, mask array ignored), "none"
    # (no masking), "dense" (arbitrary 0/1 mask array, shipped as additive bias).
    # 1) masked self-attention + dropout(identity) + add & LayerNorm (one fused kernel)
    x = _attention_block(dec, dec, dec, params["self_attn"],
                         params["ln1_g"], params["ln1_b"], n_head,
                         mask=trg_mask, mask_mode=trg_mask_mode, self_attn=True)
    # 2) encoder-decoder attention (q = dec, per reference quirk) + add & LayerNorm
    if enc is not None:
        x = _attention_block(dec, enc, x, params["cross_attn"],
                             params["ln2_g"], params["ln2_b"], n_head,
                             mask=src_mask, mask_mode=src_mask_mode, self_attn=False)
    # 3) position-wise FFN + dropout(identity) + add & LayerNorm (one fused kernel)
    x = _ffn_block(x, params["ffn_w1"], params["ffn_b1"],
                   params["ffn_w2"], params["ffn_b2"],
                   params["ln3_g"], params["ln3_b"])
    return x


# ----------------------------- parameter init -----------------------------

def init_params(key, dmodel, ffn_hidden, n_head):
    dt = dmodel // n_head
    q_scale = 1.0 / float(dt) ** 0.5

    def attn_params(k):
        kq, kk, kv, ko = jax.random.split(k, 4)
        wq = jax.random.normal(kq, (dmodel, dmodel), jnp.float32) * 0.02
        wk = jax.random.normal(kk, (dmodel, dmodel), jnp.float32) * 0.02
        wv = jax.random.normal(kv, (dmodel, dmodel), jnp.float32) * 0.02
        wo = jax.random.normal(ko, (dmodel, dmodel), jnp.float32) * 0.02
        # Q, K, V packed into one (D, 3D) projection.  The 1/sqrt(head_dim) softmax
        # scale is baked into the Q columns (a nonzero Q bias must be pre-scaled too).
        wqkv = jnp.concatenate([wq * q_scale, wk, wv], axis=1)
        return {
            "wqkv": wqkv.astype(jnp.bfloat16),
            "bqkv": jnp.zeros((1, 3 * dmodel), jnp.float32),
            "wo": wo.astype(jnp.bfloat16),
            "bo": jnp.zeros((1, dmodel), jnp.float32),
        }

    k1, k2, k3, k4 = jax.random.split(key, 4)
    return {
        "self_attn": attn_params(k1),
        "cross_attn": attn_params(k2),
        "ln1_g": jnp.ones((1, dmodel), jnp.float32),
        "ln1_b": jnp.zeros((1, dmodel), jnp.float32),
        "ln2_g": jnp.ones((1, dmodel), jnp.float32),
        "ln2_b": jnp.zeros((1, dmodel), jnp.float32),
        "ln3_g": jnp.ones((1, dmodel), jnp.float32),
        "ln3_b": jnp.zeros((1, dmodel), jnp.float32),
        "ffn_w1": (jax.random.normal(k3, (dmodel, ffn_hidden), jnp.float32) * 0.02
                   ).astype(jnp.bfloat16),
        "ffn_b1": jnp.zeros((1, ffn_hidden), jnp.float32),
        "ffn_w2": (jax.random.normal(k4, (ffn_hidden, dmodel), jnp.float32) * 0.02
                   ).astype(jnp.bfloat16),
        "ffn_b2": jnp.zeros((1, dmodel), jnp.float32),
    }


# ----------------------------- main -----------------------------

if __name__ == "__main__":
    B, S_dec, S_enc = 2, 8, 8
    dmodel, ffn_hidden, n_head = 32, 64, 4

    key = jax.random.PRNGKey(0)
    kp, kd, ke = jax.random.split(key, 3)
    params = init_params(kp, dmodel, ffn_hidden, n_head)

    dec = jax.random.normal(kd, (B, S_dec, dmodel), jnp.float32)
    enc = jax.random.normal(ke, (B, S_enc, dmodel), jnp.float32)

    # causal target mask (B, 1, S_dec, S_dec); full source mask (B, 1, S_dec, S_enc)
    trg_mask = jnp.broadcast_to(
        jnp.tril(jnp.ones((S_dec, S_dec), jnp.int32)), (B, 1, S_dec, S_dec))
    src_mask = jnp.ones((B, 1, S_dec, S_enc), jnp.int32)

    probe_single_buffered_weights()  # enable single-buffered resident weights if supported

    fwd = jax.jit(decoder_layer, static_argnums=(5, 6, 7))

    # Fast path: causal mask generated in-kernel, all-ones src mask skipped entirely.
    out = fwd(dec, enc, None, None, params, n_head, "causal", "none")
    out = jax.block_until_ready(out)

    # Generic dense-mask path (module's original interface); must agree with fast path.
    out_dense = fwd(dec, enc, trg_mask, src_mask, params, n_head, "dense", "dense")
    out_dense = jax.block_until_ready(out_dense)

    assert out.shape == (B, S_dec, dmodel)
    assert bool(jnp.all(jnp.isfinite(out)))
    assert bool(jnp.allclose(out, out_dense, atol=1e-3, rtol=1e-3))
    print("KERNEL_OK")
</pallas_src>

<mosaic_0001>
module attributes {stable_mosaic.version = 11 : i64} {
  func.func @copy_kernel(%arg0: i32, %arg1: memref<8x128xf32, #tpu.memory_space<vmem>>, %arg2: memref<8x128xf32, #tpu.memory_space<vmem>>) attributes {dimension_semantics = [#tpu.dimension_semantics<arbitrary>], iteration_bounds = array<i64: 2>, scalar_prefetch = 0 : i64, scratch_operands = 0 : i64, tpu.core_type = #tpu.core_type<tc>, window_params = [{pipeline_mode = #tpu.pipeline_mode<synchronous>, transform_indices = @transform_0, window_bounds = array<i64: 8, 128>}, {transform_indices = @transform_1, window_bounds = array<i64: 8, 128>}]} {
    %c0 = arith.constant 0 : index
    %c0_0 = arith.constant 0 : index
    %0 = vector.load %arg1[%c0, %c0_0] : memref<8x128xf32, #tpu.memory_space<vmem>>, vector<8x128xf32>
    %c0_1 = arith.constant 0 : index
    %c0_2 = arith.constant 0 : index
    %1 = vector.load %arg2[%c0_1, %c0_2] : memref<8x128xf32, #tpu.memory_space<vmem>>, vector<8x128xf32>
    tpu.vector_store %arg2[%c0_1, %c0_2], %0 {strides = array<i32>} : memref<8x128xf32, #tpu.memory_space<vmem>>, vector<8x128xf32>,
    return
  }
  func.func @transform_0(%arg0: i32) -> (i32, i32) {
    %c0_i32 = arith.constant 0 : i32
    %c0_i32_0 = arith.constant 0 : i32
    %c0_i32_1 = arith.constant 0 : i32
    return %c0_i32, %c0_i32_0 : i32, i32
  }
  func.func @transform_1(%arg0: i32) -> (i32, i32) {
    %c0_i32 = arith.constant 0 : i32
    %c0_i32_0 = arith.constant 0 : i32
    return %arg0, %c0_i32 : i32, i32
  }
}

module attributes {stable_mosaic.version = 11 : i64} {
  func.func @_ffn_block_kernel(%arg0: i32, %arg1: memref<16x32xf32, #tpu.memory_space<vmem>>, %arg2: memref<32x64xbf16, #tpu.memory_space<vmem>>, %arg3: memref<1x64xf32, #tpu.memory_space<vmem>>, %arg4: memref<64x32xbf16, #tpu.memory_space<vmem>>, %arg5: memref<1x32xf32, #tpu.memory_space<vmem>>, %arg6: memref<1x32xf32, #tpu.memory_space<vmem>>, %arg7: memref<1x32xf32, #tpu.memory_space<vmem>>, %arg8: memref<16x32xf32, #tpu.memory_space<vmem>>) attributes {dimension_semantics = [#tpu.dimension_semantics<parallel>], iteration_bounds = array<i64: 1>, scalar_prefetch = 0 : i64, scratch_operands = 0 : i64, tpu.core_type = #tpu.core_type<tc>, window_params = [{transform_indices = @transform_0, window_bounds = array<i64: 16, 32>}, {pipeline_mode = #tpu.pipeline_mode<synchronous>, transform_indices = @transform_1, window_bounds = array<i64: 32, 64>}, {pipeline_mode = #tpu.pipeline_mode<synchronous>, transform_indices = @transform_2, window_bounds = array<i64: 1, 64>}, {pipeline_mode = #tpu.pipeline_mode<synchronous>, transform_indices = @transform_3, window_bounds = array<i64: 64, 32>}, {pipeline_mode = #tpu.pipeline_mode<synchronous>, transform_indices = @transform_4, window_bounds = array<i64: 1, 32>}, {pipeline_mode = #tpu.pipeline_mode<synchronous>, transform_indices = @transform_5, window_bounds = array<i64: 1, 32>}, {pipeline_mode = #tpu.pipeline_mode<synchronous>, transform_indices = @transform_6, window_bounds = array<i64: 1, 32>}, {transform_indices = @transform_7, window_bounds = array<i64: 16, 32>}]} {
    %c0 = arith.constant 0 : index
    %c0_0 = arith.constant 0 : index
    %0 = vector.load %arg1[%c0, %c0_0] : memref<16x32xf32, #tpu.memory_space<vmem>>, vector<16x32xf32>
    %1 = arith.truncf %0 : vector<16x32xf32> to vector<16x32xbf16>
    %c0_1 = arith.constant 0 : index
    %c0_2 = arith.constant 0 : index
    %2 = vector.load %arg2[%c0_1, %c0_2] : memref<32x64xbf16, #tpu.memory_space<vmem>>, vector<32x64xbf16>
    %cst = arith.constant dense<0.000000e+00> : vector<16x64xf32>
    %3 = tpu.matmul %1, %2, %cst {dimension_numbers = #tpu.dot_dimension_numbers<[1], [0], [0], [1], [0, 0, 1, 1], [], []>} : vector<16x32xbf16>, vector<32x64xbf16>, vector<16x64xf32> -> vector<16x64xf32>
    %c0_3 = arith.constant 0 : index
    %c0_4 = arith.constant 0 : index
    %4 = vector.load %arg3[%c0_3, %c0_4] : memref<1x64xf32, #tpu.memory_space<vmem>>, vector<1x64xf32>
    %5 = vector.broadcast %4 : vector<1x64xf32> to vector<16x64xf32>
    %6 = arith.addf %3, %5 : vector<16x64xf32>
    %cst_5 = arith.constant 0.000000e+00 : f32
    %7 = vector.broadcast %cst_5 : f32 to vector<16x64xf32>
    %8 = arith.maximumf %6, %7 : vector<16x64xf32>
    %9 = arith.truncf %8 : vector<16x64xf32> to vector<16x64xbf16>
    %c0_6 = arith.constant 0 : index
    %c0_7 = arith.constant 0 : index
    %10 = vector.load %arg4[%c0_6, %c0_7] : memref<64x32xbf16, #tpu.memory_space<vmem>>, vector<64x32xbf16>
    %cst_8 = arith.constant dense<0.000000e+00> : vector<16x32xf32>
    %11 = tpu.matmul %9, %10, %cst_8 {dimension_numbers = #tpu.dot_dimension_numbers<[1], [0], [0], [1], [0, 0, 1, 1], [], []>} : vector<16x64xbf16>, vector<64x32xbf16>, vector<16x32xf32> -> vector<16x32xf32>
    %c0_9 = arith.constant 0 : index
    %c0_10 = arith.constant 0 : index
    %12 = vector.load %arg5[%c0_9, %c0_10] : memref<1x32xf32, #tpu.memory_space<vmem>>, vector<1x32xf32>
    %13 = vector.broadcast %12 : vector<1x32xf32> to vector<16x32xf32>
    %14 = arith.addf %11, %13 : vector<16x32xf32>
    %15 = arith.addf %14, %0 : vector<16x32xf32>
    %c0_11 = arith.constant 0 : index
    %c0_12 = arith.constant 0 : index
    %16 = vector.load %arg6[%c0_11, %c0_12] : memref<1x32xf32, #tpu.memory_space<vmem>>, vector<1x32xf32>
    %c0_13 = arith.constant 0 : index
    %c0_14 = arith.constant 0 : index
    %17 = vector.load %arg7[%c0_13, %c0_14] : memref<1x32xf32, #tpu.memory_space<vmem>>, vector<1x32xf32>
    %cst_15 = arith.constant dense<0.000000e+00> : vector<16xf32>
    %18 = vector.multi_reduction <add>, %15, %cst_15 [1] : vector<16x32xf32> to vector<16xf32>
    %19 = vector.shape_cast %18 : vector<16xf32> to vector<16x1xf32>
    %cst_16 = arith.constant 3.200000e+01 : f32
    %20 = vector.broadcast %cst_16 : f32 to vector<16x1xf32>
    %21 = arith.divf %19, %20 : vector<16x1xf32>
    %22 = vector.broadcast %21 : vector<16x1xf32> to vector<16x32xf32>
    %23 = arith.subf %15, %22 : vector<16x32xf32>
    %24 = arith.mulf %23, %23 : vector<16x32xf32>
    %cst_17 = arith.constant dense<0.000000e+00> : vector<16xf32>
    %25 = vector.multi_reduction <add>, %24, %cst_17 [1] : vector<16x32xf32> to vector<16xf32>
    %26 = vector.shape_cast %25 : vector<16xf32> to vector<16x1xf32>
    %cst_18 = arith.constant 3.200000e+01 : f32
    %27 = vector.broadcast %cst_18 : f32 to vector<16x1xf32>
    %28 = arith.divf %26, %27 : vector<16x1xf32>
    %29 = vector.broadcast %21 : vector<16x1xf32> to vector<16x32xf32>
    %30 = arith.subf %15, %29 : vector<16x32xf32>
    %31 = vector.broadcast %16 : vector<1x32xf32> to vector<16x32xf32>
    %32 = arith.mulf %31, %30 : vector<16x32xf32>
    %cst_19 = arith.constant 9.99999996E-13 : f32
    %33 = vector.broadcast %cst_19 : f32 to vector<16x1xf32>
    %34 = arith.addf %28, %33 : vector<16x1xf32>
    %35 = math.rsqrt %34 : vector<16x1xf32>
    %36 = vector.broadcast %35 : vector<16x1xf32> to vector<16x32xf32>
    %37 = arith.mulf %32, %36 : vector<16x32xf32>
    %38 = vector.broadcast %17 : vector<1x32xf32> to vector<16x32xf32>
    %39 = arith.addf %37, %38 : vector<16x32xf32>
    %c0_20 = arith.constant 0 : index
    %c0_21 = arith.constant 0 : index
    %40 = vector.load %arg8[%c0_20, %c0_21] : memref<16x32xf32, #tpu.memory_space<vmem>>, vector<16x32xf32>
    tpu.vector_store %arg8[%c0_20, %c0_21], %39 {strides = array<i32>} : memref<16x32xf32, #tpu.memory_space<vmem>>, vector<16x32xf32>,
    return
  }
  func.func @transform_0(%arg0: i32) -> (i32, i32) {
    %c0_i32 = arith.constant 0 : i32
    %c0_i32_0 = arith.constant 0 : i32
    return %arg0, %c0_i32 : i32, i32
  }
  func.func @transform_1(%arg0: i32) -> (i32, i32) {
    %c0_i32 = arith.constant 0 : i32
    %c0_i32_0 = arith.constant 0 : i32
    %c0_i32_1 = arith.constant 0 : i32
    return %c0_i32, %c0_i32_0 : i32, i32
  }
  func.func @transform_2(%arg0: i32) -> (i32, i32) {
    %c0_i32 = arith.constant 0 : i32
    %c0_i32_0 = arith.constant 0 : i32
    %c0_i32_1 = arith.constant 0 : i32
    return %c0_i32, %c0_i32_0 : i32, i32
  }
  func.func @transform_3(%arg0: i32) -> (i32, i32) {
    %c0_i32 = arith.constant 0 : i32
    %c0_i32_0 = arith.constant 0 : i32
    %c0_i32_1 = arith.constant 0 : i32
    return %c0_i32, %c0_i32_0 : i32, i32
  }
  func.func @transform_4(%arg0: i32) -> (i32, i32) {
    %c0_i32 = arith.constant 0 : i32
    %c0_i32_0 = arith.constant 0 : i32
    %c0_i32_1 = arith.constant 0 : i32
    return %c0_i32, %c0_i32_0 : i32, i32
  }
  func.func @transform_5(%arg0: i32) -> (i32, i32) {
    %c0_i32 = arith.constant 0 : i32
    %c0_i32_0 = arith.constant 0 : i32
    %c0_i32_1 = arith.constant 0 : i32
    return %c0_i32, %c0_i32_0 : i32, i32
  }
  func.func @transform_6(%arg0: i32) -> (i32, i32) {
    %c0_i32 = arith.constant 0 : i32
    %c0_i32_0 = arith.constant 0 : i32
    %c0_i32_1 = arith.constant 0 : i32
    return %c0_i32, %c0_i32_0 : i32, i32
  }
  func.func @transform_7(%arg0: i32) -> (i32, i32) {
    %c0_i32 = arith.constant 0 : i32
    %c0_i32_0 = arith.constant 0 : i32
    return %arg0, %c0_i32 : i32, i32
  }
}

module attributes {stable_mosaic.version = 11 : i64} {
  func.func @_attn_block_kernel(%arg0: i32, %arg1: i32, %arg2: memref<1x8x32xf32, #tpu.memory_space<vmem>>, %arg3: memref<1x8x32xf32, #tpu.memory_space<vmem>>, %arg4: memref<1x8x32xf32, #tpu.memory_space<vmem>>, %arg5: memref<32x96xbf16, #tpu.memory_space<vmem>>, %arg6: memref<1x96xf32, #tpu.memory_space<vmem>>, %arg7: memref<32x32xbf16, #tpu.memory_space<vmem>>, %arg8: memref<1x32xf32, #tpu.memory_space<vmem>>, %arg9: memref<1x32xf32, #tpu.memory_space<vmem>>, %arg10: memref<1x32xf32, #tpu.memory_space<vmem>>, %arg11: memref<1x8x32xf32, #tpu.memory_space<vmem>>, %arg12: memref<8x32xf32, #tpu.memory_space<vmem>>) attributes {dimension_semantics = [#tpu.dimension_semantics<parallel>, #tpu.dimension_semantics<parallel>], iteration_bounds = array<i64: 2, 1>, scalar_prefetch = 0 : i64, scratch_operands = 1 : i64, tpu.core_type = #tpu.core_type<tc>, window_params = [{transform_indices = @transform_0, window_bounds = array<i64: 1, 8, 32>}, {transform_indices = @transform_1, window_bounds = array<i64: 1, 8, 32>}, {transform_indices = @transform_2, window_bounds = array<i64: 1, 8, 32>}, {pipeline_mode = #tpu.pipeline_mode<synchronous>, transform_indices = @transform_3, window_bounds = array<i64: 32, 96>}, {pipeline_mode = #tpu.pipeline_mode<synchronous>, transform_indices = @transform_4, window_bounds = array<i64: 1, 96>}, {pipeline_mode = #tpu.pipeline_mode<synchronous>, transform_indices = @transform_5, window_bounds = array<i64: 32, 32>}, {pipeline_mode = #tpu.pipeline_mode<synchronous>, transform_indices = @transform_6, window_bounds = array<i64: 1, 32>}, {pipeline_mode = #tpu.pipeline_mode<synchronous>, transform_indices = @transform_7, window_bounds = array<i64: 1, 32>}, {pipeline_mode = #tpu.pipeline_mode<synchronous>, transform_indices = @transform_8, window_bounds = array<i64: 1, 32>}, {transform_indices = @transform_9, window_bounds = array<i64: 1, 8, 32>}]} {
    %c0 = arith.constant 0 : index
    %c0_0 = arith.constant 0 : index
    %c0_1 = arith.constant 0 : index
    %0 = vector.load %arg2[%c0, %c0_0, %c0_1] : memref<1x8x32xf32, #tpu.memory_space<vmem>>, vector<1x8x32xf32>
    %1 = vector.shape_cast %0 : vector<1x8x32xf32> to vector<8x32xf32>
    %c0_2 = arith.constant 0 : index
    %c0_3 = arith.constant 0 : index
    %c0_4 = arith.constant 0 : index
    %2 = vector.load %arg3[%c0_2, %c0_3, %c0_4] : memref<1x8x32xf32, #tpu.memory_space<vmem>>, vector<1x8x32xf32>
    %3 = vector.shape_cast %2 : vector<1x8x32xf32> to vector<8x32xf32>
    %c0_5 = arith.constant 0 : index
    %c0_6 = arith.constant 0 : index
    %c0_7 = arith.constant 0 : index
    %4 = vector.load %arg4[%c0_5, %c0_6, %c0_7] : memref<1x8x32xf32, #tpu.memory_space<vmem>>, vector<1x8x32xf32>
    %5 = vector.shape_cast %4 : vector<1x8x32xf32> to vector<8x32xf32>
    %6 = arith.truncf %1 : vector<8x32xf32> to vector<8x32xbf16>
    %c0_8 = arith.constant 0 : index
    %c0_9 = arith.constant 0 : index
    %7 = vector.load %arg5[%c0_8, %c0_9] : memref<32x96xbf16, #tpu.memory_space<vmem>>, vector<32x32xbf16>
    %cst = arith.constant dense<0.000000e+00> : vector<8x32xf32>
    %8 = tpu.matmul %6, %7, %cst {dimension_numbers = #tpu.dot_dimension_numbers<[1], [0], [0], [1], [0, 0, 1, 1], [], []>} : vector<8x32xbf16>, vector<32x32xbf16>, vector<8x32xf32> -> vector<8x32xf32>
    %c0_10 = arith.constant 0 : index
    %c0_11 = arith.constant 0 : index
    %9 = vector.load %arg6[%c0_10, %c0_11] : memref<1x96xf32, #tpu.memory_space<vmem>>, vector<1x32xf32>
    %10 = vector.broadcast %9 : vector<1x32xf32> to vector<8x32xf32>
    %11 = arith.addf %8, %10 : vector<8x32xf32>
    %12 = arith.truncf %3 : vector<8x32xf32> to vector<8x32xbf16>
    %c0_12 = arith.constant 0 : index
    %c32 = arith.constant 32 : index
    %13 = vector.load %arg5[%c0_12, %c32] : memref<32x96xbf16, #tpu.memory_space<vmem>>, vector<32x64xbf16>
    %cst_13 = arith.constant dense<0.000000e+00> : vector<8x64xf32>
    %14 = tpu.matmul %12, %13, %cst_13 {dimension_numbers = #tpu.dot_dimension_numbers<[1], [0], [0], [1], [0, 0, 1, 1], [], []>} : vector<8x32xbf16>, vector<32x64xbf16>, vector<8x64xf32> -> vector<8x64xf32>
    %c0_14 = arith.constant 0 : index
    %c32_15 = arith.constant 32 : index
    %15 = vector.load %arg6[%c0_14, %c32_15] : memref<1x96xf32, #tpu.memory_space<vmem>>, vector<1x64xf32>
    %16 = vector.broadcast %15 : vector<1x64xf32> to vector<8x64xf32>
    %17 = arith.addf %14, %16 : vector<8x64xf32>
    %18 = arith.truncf %11 : vector<8x32xf32> to vector<8x32xbf16>
    %19 = arith.truncf %17 : vector<8x64xf32> to vector<8x64xbf16>
    %20 = vector.extract_strided_slice %19 {offsets = [0, 0], sizes = [8, 32], strides = [1, 1]} : vector<8x64xbf16> to vector<8x32xbf16>
    %21 = vector.extract_strided_slice %19 {offsets = [0, 32], sizes = [8, 32], strides = [1, 1]} : vector<8x64xbf16> to vector<8x32xbf16>
    %22 = vector.extract_strided_slice %18 {offsets = [0, 0], sizes = [8, 8], strides = [1, 1]} : vector<8x32xbf16> to vector<8x8xbf16>
    %23 = vector.extract_strided_slice %20 {offsets = [0, 0], sizes = [8, 8], strides = [1, 1]} : vector<8x32xbf16> to vector<8x8xbf16>
    %cst_16 = arith.constant dense<0.000000e+00> : vector<8x8xf32>
    %24 = tpu.matmul %22, %23, %cst_16 {dimension_numbers = #tpu.dot_dimension_numbers<[1], [1], [0], [0], [0, 0, 1, 0], [], []>} : vector<8x8xbf16>, vector<8x8xbf16>, vector<8x8xf32> -> vector<8x8xf32>
    %cst_17 = arith.constant dense<0xFF800000> : vector<8xf32>
    %25 = vector.multi_reduction <maximumf>, %24, %cst_17 [1] : vector<8x8xf32> to vector<8xf32>
    %26 = vector.shape_cast %25 : vector<8xf32> to vector<8x1xf32>
    %27 = vector.broadcast %26 : vector<8x1xf32> to vector<8x8xf32>
    %28 = arith.subf %24, %27 : vector<8x8xf32>
    %29 = math.exp %28 : vector<8x8xf32>
    %cst_18 = arith.constant dense<0.000000e+00> : vector<8xf32>
    %30 = vector.multi_reduction <add>, %29, %cst_18 [1] : vector<8x8xf32> to vector<8xf32>
    %31 = vector.shape_cast %30 : vector<8xf32> to vector<8x1xf32>
    %32 = arith.truncf %29 : vector<8x8xf32> to vector<8x8xbf16>
    %33 = vector.extract_strided_slice %21 {offsets = [0, 0], sizes = [8, 8], strides = [1, 1]} : vector<8x32xbf16> to vector<8x8xbf16>
    %cst_19 = arith.constant dense<0.000000e+00> : vector<8x8xf32>
    %34 = tpu.matmul %32, %33, %cst_19 {dimension_numbers = #tpu.dot_dimension_numbers<[1], [0], [0], [1], [0, 0, 1, 1], [], []>} : vector<8x8xbf16>, vector<8x8xbf16>, vector<8x8xf32> -> vector<8x8xf32>
    %35 = tpu.reciprocal %31 {approx = true} : vector<8x1xf32> -> vector<8x1xf32>
    %36 = vector.broadcast %35 : vector<8x1xf32> to vector<8x8xf32>
    %37 = arith.mulf %34, %36 : vector<8x8xf32>
    %c0_20 = arith.constant 0 : index
    %c0_21 = arith.constant 0 : index
    %38 = vector.load %arg12[%c0_20, %c0_21] : memref<8x32xf32, #tpu.memory_space<vmem>>, vector<8x8xf32>
    tpu.vector_store %arg12[%c0_20, %c0_21], %37 {strides = array<i32>} : memref<8x32xf32, #tpu.memory_space<vmem>>, vector<8x8xf32>,
    %39 = vector.extract_strided_slice %18 {offsets = [0, 8], sizes = [8, 8], strides = [1, 1]} : vector<8x32xbf16> to vector<8x8xbf16>
    %40 = vector.extract_strided_slice %20 {offsets = [0, 8], sizes = [8, 8], strides = [1, 1]} : vector<8x32xbf16> to vector<8x8xbf16>
    %cst_22 = arith.constant dense<0.000000e+00> : vector<8x8xf32>
    %41 = tpu.matmul %39, %40, %cst_22 {dimension_numbers = #tpu.dot_dimension_numbers<[1], [1], [0], [0], [0, 0, 1, 0], [], []>} : vector<8x8xbf16>, vector<8x8xbf16>, vector<8x8xf32> -> vector<8x8xf32>
    %cst_23 = arith.constant dense<0xFF800000> : vector<8xf32>
    %42 = vector.multi_reduction <maximumf>, %41, %cst_23 [1] : vector<8x8xf32> to vector<8xf32>
    %43 = vector.shape_cast %42 : vector<8xf32> to vector<8x1xf32>
    %44 = vector.broadcast %43 : vector<8x1xf32> to vector<8x8xf32>
    %45 = arith.subf %41, %44 : vector<8x8xf32>
    %46 = math.exp %45 : vector<8x8xf32>
    %cst_24 = arith.constant dense<0.000000e+00> : vector<8xf32>
    %47 = vector.multi_reduction <add>, %46, %cst_24 [1] : vector<8x8xf32> to vector<8xf32>
    %48 = vector.shape_cast %47 : vector<8xf32> to vector<8x1xf32>
    %49 = arith.truncf %46 : vector<8x8xf32> to vector<8x8xbf16>
    %50 = vector.extract_strided_slice %21 {offsets = [0, 8], sizes = [8, 8], strides = [1, 1]} : vector<8x32xbf16> to vector<8x8xbf16>
    %cst_25 = arith.constant dense<0.000000e+00> : vector<8x8xf32>
    %51 = tpu.matmul %49, %50, %cst_25 {dimension_numbers = #tpu.dot_dimension_numbers<[1], [0], [0], [1], [0, 0, 1, 1], [], []>} : vector<8x8xbf16>, vector<8x8xbf16>, vector<8x8xf32> -> vector<8x8xf32>
    %52 = tpu.reciprocal %48 {approx = true} : vector<8x1xf32> -> vector<8x1xf32>
    %53 = vector.broadcast %52 : vector<8x1xf32> to vector<8x8xf32>
    %54 = arith.mulf %51, %53 : vector<8x8xf32>
    %c0_26 = arith.constant 0 : index
    %c8 = arith.constant 8 : index
    %55 = vector.load %arg12[%c0_26, %c8] : memref<8x32xf32, #tpu.memory_space<vmem>>, vector<8x8xf32>
    tpu.vector_store %arg12[%c0_26, %c8], %54 {strides = array<i32>} : memref<8x32xf32, #tpu.memory_space<vmem>>, vector<8x8xf32>,
    %56 = vector.extract_strided_slice %18 {offsets = [0, 16], sizes = [8, 8], strides = [1, 1]} : vector<8x32xbf16> to vector<8x8xbf16>
    %57 = vector.extract_strided_slice %20 {offsets = [0, 16], sizes = [8, 8], strides = [1, 1]} : vector<8x32xbf16> to vector<8x8xbf16>
    %cst_27 = arith.constant dense<0.000000e+00> : vector<8x8xf32>
    %58 = tpu.matmul %56, %57, %cst_27 {dimension_numbers = #tpu.dot_dimension_numbers<[1], [1], [0], [0], [0, 0, 1, 0], [], []>} : vector<8x8xbf16>, vector<8x8xbf16>, vector<8x8xf32> -> vector<8x8xf32>
    %cst_28 = arith.constant dense<0xFF800000> : vector<8xf32>
    %59 = vector.multi_reduction <maximumf>, %58, %cst_28 [1] : vector<8x8xf32> to vector<8xf32>
    %60 = vector.shape_cast %59 : vector<8xf32> to vector<8x1xf32>
    %61 = vector.broadcast %60 : vector<8x1xf32> to vector<8x8xf32>
    %62 = arith.subf %58, %61 : vector<8x8xf32>
    %63 = math.exp %62 : vector<8x8xf32>
    %cst_29 = arith.constant dense<0.000000e+00> : vector<8xf32>
    %64 = vector.multi_reduction <add>, %63, %cst_29 [1] : vector<8x8xf32> to vector<8xf32>
    %65 = vector.shape_cast %64 : vector<8xf32> to vector<8x1xf32>
    %66 = arith.truncf %63 : vector<8x8xf32> to vector<8x8xbf16>
    %67 = vector.extract_strided_slice %21 {offsets = [0, 16], sizes = [8, 8], strides = [1, 1]} : vector<8x32xbf16> to vector<8x8xbf16>
    %cst_30 = arith.constant dense<0.000000e+00> : vector<8x8xf32>
    %68 = tpu.matmul %66, %67, %cst_30 {dimension_numbers = #tpu.dot_dimension_numbers<[1], [0], [0], [1], [0, 0, 1, 1], [], []>} : vector<8x8xbf16>, vector<8x8xbf16>, vector<8x8xf32> -> vector<8x8xf32>
    %69 = tpu.reciprocal %65 {approx = true} : vector<8x1xf32> -> vector<8x1xf32>
    %70 = vector.broadcast %69 : vector<8x1xf32> to vector<8x8xf32>
    %71 = arith.mulf %68, %70 : vector<8x8xf32>
    %c0_31 = arith.constant 0 : index
    %c16 = arith.constant 16 : index
    %72 = vector.load %arg12[%c0_31, %c16] : memref<8x32xf32, #tpu.memory_space<vmem>>, vector<8x8xf32>
    tpu.vector_store %arg12[%c0_31, %c16], %71 {strides = array<i32>} : memref<8x32xf32, #tpu.memory_space<vmem>>, vector<8x8xf32>,
    %73 = vector.extract_strided_slice %18 {offsets = [0, 24], sizes = [8, 8], strides = [1, 1]} : vector<8x32xbf16> to vector<8x8xbf16>
    %74 = vector.extract_strided_slice %20 {offsets = [0, 24], sizes = [8, 8], strides = [1, 1]} : vector<8x32xbf16> to vector<8x8xbf16>
    %cst_32 = arith.constant dense<0.000000e+00> : vector<8x8xf32>
    %75 = tpu.matmul %73, %74, %cst_32 {dimension_numbers = #tpu.dot_dimension_numbers<[1], [1], [0], [0], [0, 0, 1, 0], [], []>} : vector<8x8xbf16>, vector<8x8xbf16>, vector<8x8xf32> -> vector<8x8xf32>
    %cst_33 = arith.constant dense<0xFF800000> : vector<8xf32>
    %76 = vector.multi_reduction <maximumf>, %75, %cst_33 [1] : vector<8x8xf32> to vector<8xf32>
    %77 = vector.shape_cast %76 : vector<8xf32> to vector<8x1xf32>
    %78 = vector.broadcast %77 : vector<8x1xf32> to vector<8x8xf32>
    %79 = arith.subf %75, %78 : vector<8x8xf32>
    %80 = math.exp %79 : vector<8x8xf32>
    %cst_34 = arith.constant dense<0.000000e+00> : vector<8xf32>
    %81 = vector.multi_reduction <add>, %80, %cst_34 [1] : vector<8x8xf32> to vector<8xf32>
    %82 = vector.shape_cast %81 : vector<8xf32> to vector<8x1xf32>
    %83 = arith.truncf %80 : vector<8x8xf32> to vector<8x8xbf16>
    %84 = vector.extract_strided_slice %21 {offsets = [0, 24], sizes = [8, 8], strides = [1, 1]} : vector<8x32xbf16> to vector<8x8xbf16>
    %cst_35 = arith.constant dense<0.000000e+00> : vector<8x8xf32>
    %85 = tpu.matmul %83, %84, %cst_35 {dimension_numbers = #tpu.dot_dimension_numbers<[1], [0], [0], [1], [0, 0, 1, 1], [], []>} : vector<8x8xbf16>, vector<8x8xbf16>, vector<8x8xf32> -> vector<8x8xf32>
    %86 = tpu.reciprocal %82 {approx = true} : vector<8x1xf32> -> vector<8x1xf32>
    %87 = vector.broadcast %86 : vector<8x1xf32> to vector<8x8xf32>
    %88 = arith.mulf %85, %87 : vector<8x8xf32>
    %c0_36 = arith.constant 0 : index
    %c24 = arith.constant 24 : index
    %89 = vector.load %arg12[%c0_36, %c24] : memref<8x32xf32, #tpu.memory_space<vmem>>, vector<8x8xf32>
    tpu.vector_store %arg12[%c0_36, %c24], %88 {strides = array<i32>} : memref<8x32xf32, #tpu.memory_space<vmem>>, vector<8x8xf32>,
    %c0_37 = arith.constant 0 : index
    %c0_38 = arith.constant 0 : index
    %90 = vector.load %arg12[%c0_37, %c0_38] : memref<8x32xf32, #tpu.memory_space<vmem>>, vector<8x32xf32>
    %91 = arith.truncf %90 : vector<8x32xf32> to vector<8x32xbf16>
    %c0_39 = arith.constant 0 : index
    %c0_40 = arith.constant 0 : index
    %92 = vector.load %arg7[%c0_39, %c0_40] : memref<32x32xbf16, #tpu.memory_space<vmem>>, vector<32x32xbf16>
    %cst_41 = arith.constant dense<0.000000e+00> : vector<8x32xf32>
    %93 = tpu.matmul %91, %92, %cst_41 {dimension_numbers = #tpu.dot_dimension_numbers<[1], [0], [0], [1], [0, 0, 1, 1], [], []>} : vector<8x32xbf16>, vector<32x32xbf16>, vector<8x32xf32> -> vector<8x32xf32>
    %c0_42 = arith.constant 0 : index
    %c0_43 = arith.constant 0 : index
    %94 = vector.load %arg8[%c0_42, %c0_43] : memref<1x32xf32, #tpu.memory_space<vmem>>, vector<1x32xf32>
    %95 = vector.broadcast %94 : vector<1x32xf32> to vector<8x32xf32>
    %96 = arith.addf %93, %95 : vector<8x32xf32>
    %97 = arith.addf %96, %5 : vector<8x32xf32>
    %c0_44 = arith.constant 0 : index
    %c0_45 = arith.constant 0 : index
    %98 = vector.load %arg9[%c0_44, %c0_45] : memref<1x32xf32, #tpu.memory_space<vmem>>, vector<1x32xf32>
    %c0_46 = arith.constant 0 : index
    %c0_47 = arith.constant 0 : index
    %99 = vector.load %arg10[%c0_46, %c0_47] : memref<1x32xf32, #tpu.memory_space<vmem>>, vector<1x32xf32>
    %cst_48 = arith.constant dense<0.000000e+00> : vector<8xf32>
    %100 = vector.multi_reduction <add>, %97, %cst_48 [1] : vector<8x32xf32> to vector<8xf32>
    %101 = vector.shape_cast %100 : vector<8xf32> to vector<8x1xf32>
    %cst_49 = arith.constant 3.200000e+01 : f32
    %102 = vector.broadcast %cst_49 : f32 to vector<8x1xf32>
    %103 = arith.divf %101, %102 : vector<8x1xf32>
    %104 = vector.broadcast %103 : vector<8x1xf32> to vector<8x32xf32>
    %105 = arith.subf %97, %104 : vector<8x32xf32>
    %106 = arith.mulf %105, %105 : vector<8x32xf32>
    %cst_50 = arith.constant dense<0.000000e+00> : vector<8xf32>
    %107 = vector.multi_reduction <add>, %106, %cst_50 [1] : vector<8x32xf32> to vector<8xf32>
    %108 = vector.shape_cast %107 : vector<8xf32> to vector<8x1xf32>
    %cst_51 = arith.constant 3.200000e+01 : f32
    %109 = vector.broadcast %cst_51 : f32 to vector<8x1xf32>
    %110 = arith.divf %108, %109 : vector<8x1xf32>
    %111 = vector.broadcast %103 : vector<8x1xf32> to vector<8x32xf32>
    %112 = arith.subf %97, %111 : vector<8x32xf32>
    %113 = vector.broadcast %98 : vector<1x32xf32> to vector<8x32xf32>
    %114 = arith.mulf %113, %112 : vector<8x32xf32>
    %cst_52 = arith.constant 9.99999996E-13 : f32
    %115 = vector.broadcast %cst_52 : f32 to vector<8x1xf32>
    %116 = arith.addf %110, %115 : vector<8x1xf32>
    %117 = math.rsqrt %116 : vector<8x1xf32>
    %118 = vector.broadcast %117 : vector<8x1xf32> to vector<8x32xf32>
    %119 = arith.mulf %114, %118 : vector<8x32xf32>
    %120 = vector.broadcast %99 : vector<1x32xf32> to vector<8x32xf32>
    %121 = arith.addf %119, %120 : vector<8x32xf32>
    %c0_53 = arith.constant 0 : index
    %c0_54 = arith.constant 0 : index
    %c0_55 = arith.constant 0 : index
    %122 = vector.load %arg11[%c0_53, %c0_54, %c0_55] : memref<1x8x32xf32, #tpu.memory_space<vmem>>, vector<1x8x32xf32>
    %123 = vector.shape_cast %122 : vector<1x8x32xf32> to vector<8x32xf32>
    %124 = vector.shape_cast %121 : vector<8x32xf32> to vector<1x8x32xf32>
    tpu.vector_store %arg11[%c0_53, %c0_54, %c0_55], %124 {strides = array<i32>} : memref<1x8x32xf32, #tpu.memory_space<vmem>>, vector<1x8x32xf32>,
    return
  }
  func.func @transform_0(%arg0: i32, %arg1: i32) -> (i32, i32, i32) {
    %c0_i32 = arith.constant 0 : i32
    %c0_i32_0 = arith.constant 0 : i32
    return %arg0, %arg1, %c0_i32 : i32, i32, i32
  }
  func.func @transform_1(%arg0: i32, %arg1: i32) -> (i32, i32, i32) {
    %c0_i32 = arith.constant 0 : i32
    %c0_i32_0 = arith.constant 0 : i32
    %c0_i32_1 = arith.constant 0 : i32
    return %arg0, %c0_i32, %c0_i32_0 : i32, i32, i32
  }
  func.func @transform_2(%arg0: i32, %arg1: i32) -> (i32, i32, i32) {
    %c0_i32 = arith.constant 0 : i32
    %c0_i32_0 = arith.constant 0 : i32
    return %arg0, %arg1, %c0_i32 : i32, i32, i32
  }
  func.func @transform_3(%arg0: i32, %arg1: i32) -> (i32, i32) {
    %c0_i32 = arith.constant 0 : i32
    %c0_i32_0 = arith.constant 0 : i32
    %c0_i32_1 = arith.constant 0 : i32
    return %c0_i32, %c0_i32_0 : i32, i32
  }
  func.func @transform_4(%arg0: i32, %arg1: i32) -> (i32, i32) {
    %c0_i32 = arith.constant 0 : i32
    %c0_i32_0 = arith.constant 0 : i32
    %c0_i32_1 = arith.constant 0 : i32
    return %c0_i32, %c0_i32_0 : i32, i32
  }
  func.func @transform_5(%arg0: i32, %arg1: i32) -> (i32, i32) {
    %c0_i32 = arith.constant 0 : i32
    %c0_i32_0 = arith.constant 0 : i32
    %c0_i32_1 = arith.constant 0 : i32
    return %c0_i32, %c0_i32_0 : i32, i32
  }
  func.func @transform_6(%arg0: i32, %arg1: i32) -> (i32, i32) {
    %c0_i32 = arith.constant 0 : i32
    %c0_i32_0 = arith.constant 0 : i32
    %c0_i32_1 = arith.constant 0 : i32
    return %c0_i32, %c0_i32_0 : i32, i32
  }
  func.func @transform_7(%arg0: i32, %arg1: i32) -> (i32, i32) {
    %c0_i32 = arith.constant 0 : i32
    %c0_i32_0 = arith.constant 0 : i32
    %c0_i32_1 = arith.constant 0 : i32
    return %c0_i32, %c0_i32_0 : i32, i32
  }
  func.func @transform_8(%arg0: i32, %arg1: i32) -> (i32, i32) {
    %c0_i32 = arith.constant 0 : i32
    %c0_i32_0 = arith.constant 0 : i32
    %c0_i32_1 = arith.constant 0 : i32
    return %c0_i32, %c0_i32_0 : i32, i32
  }
  func.func @transform_9(%arg0: i32, %arg1: i32) -> (i32, i32, i32) {
    %c0_i32 = arith.constant 0 : i32
    %c0_i32_0 = arith.constant 0 : i32
    return %arg0, %arg1, %c0_i32 : i32, i32, i32
  }
}

module attributes {stable_mosaic.version = 11 : i64} {
  func.func @_attn_block_kernel(%arg0: i32, %arg1: i32, %arg2: memref<1x8x32xf32, #tpu.memory_space<vmem>>, %arg3: memref<1x8x32xf32, #tpu.memory_space<vmem>>, %arg4: memref<32x96xbf16, #tpu.memory_space<vmem>>, %arg5: memref<1x96xf32, #tpu.memory_space<vmem>>, %arg6: memref<32x32xbf16, #tpu.memory_space<vmem>>, %arg7: memref<1x32xf32, #tpu.memory_space<vmem>>, %arg8: memref<1x32xf32, #tpu.memory_space<vmem>>, %arg9: memref<1x32xf32, #tpu.memory_space<vmem>>, %arg10: memref<1x8x32xf32, #tpu.memory_space<vmem>>, %arg11: memref<8x32xf32, #tpu.memory_space<vmem>>) attributes {dimension_semantics = [#tpu.dimension_semantics<parallel>, #tpu.dimension_semantics<parallel>], iteration_bounds = array<i64: 2, 1>, scalar_prefetch = 0 : i64, scratch_operands = 1 : i64, tpu.core_type = #tpu.core_type<tc>, window_params = [{transform_indices = @transform_0, window_bounds = array<i64: 1, 8, 32>}, {transform_indices = @transform_1, window_bounds = array<i64: 1, 8, 32>}, {pipeline_mode = #tpu.pipeline_mode<synchronous>, transform_indices = @transform_2, window_bounds = array<i64: 32, 96>}, {pipeline_mode = #tpu.pipeline_mode<synchronous>, transform_indices = @transform_3, window_bounds = array<i64: 1, 96>}, {pipeline_mode = #tpu.pipeline_mode<synchronous>, transform_indices = @transform_4, window_bounds = array<i64: 32, 32>}, {pipeline_mode = #tpu.pipeline_mode<synchronous>, transform_indices = @transform_5, window_bounds = array<i64: 1, 32>}, {pipeline_mode = #tpu.pipeline_mode<synchronous>, transform_indices = @transform_6, window_bounds = array<i64: 1, 32>}, {pipeline_mode = #tpu.pipeline_mode<synchronous>, transform_indices = @transform_7, window_bounds = array<i64: 1, 32>}, {transform_indices = @transform_8, window_bounds = array<i64: 1, 8, 32>}]} {
    %c0 = arith.constant 0 : index
    %c0_0 = arith.constant 0 : index
    %c0_1 = arith.constant 0 : index
    %0 = vector.load %arg3[%c0, %c0_0, %c0_1] : memref<1x8x32xf32, #tpu.memory_space<vmem>>, vector<1x8x32xf32>
    %1 = vector.shape_cast %0 : vector<1x8x32xf32> to vector<8x32xf32>
    %c0_2 = arith.constant 0 : index
    %c0_3 = arith.constant 0 : index
    %c0_4 = arith.constant 0 : index
    %2 = vector.load %arg2[%c0_2, %c0_3, %c0_4] : memref<1x8x32xf32, #tpu.memory_space<vmem>>, vector<1x8x32xf32>
    %3 = vector.shape_cast %2 : vector<1x8x32xf32> to vector<8x32xf32>
    %4 = arith.truncf %1 : vector<8x32xf32> to vector<8x32xbf16>
    %c0_5 = arith.constant 0 : index
    %c0_6 = arith.constant 0 : index
    %5 = vector.load %arg4[%c0_5, %c0_6] : memref<32x96xbf16, #tpu.memory_space<vmem>>, vector<32x96xbf16>
    %cst = arith.constant dense<0.000000e+00> : vector<8x96xf32>
    %6 = tpu.matmul %4, %5, %cst {dimension_numbers = #tpu.dot_dimension_numbers<[1], [0], [0], [1], [0, 0, 1, 1], [], []>} : vector<8x32xbf16>, vector<32x96xbf16>, vector<8x96xf32> -> vector<8x96xf32>
    %c0_7 = arith.constant 0 : index
    %c0_8 = arith.constant 0 : index
    %7 = vector.load %arg5[%c0_7, %c0_8] : memref<1x96xf32, #tpu.memory_space<vmem>>, vector<1x96xf32>
    %8 = vector.broadcast %7 : vector<1x96xf32> to vector<8x96xf32>
    %9 = arith.addf %6, %8 : vector<8x96xf32>
    %10 = arith.truncf %9 : vector<8x96xf32> to vector<8x96xbf16>
    %11 = vector.extract_strided_slice %10 {offsets = [0, 0], sizes = [8, 32], strides = [1, 1]} : vector<8x96xbf16> to vector<8x32xbf16>
    %12 = vector.extract_strided_slice %10 {offsets = [0, 32], sizes = [8, 32], strides = [1, 1]} : vector<8x96xbf16> to vector<8x32xbf16>
    %13 = vector.extract_strided_slice %10 {offsets = [0, 64], sizes = [8, 32], strides = [1, 1]} : vector<8x96xbf16> to vector<8x32xbf16>
    %c8_i32 = arith.constant 8 : i32
    %14 = arith.muli %arg1, %c8_i32 : i32
    %15 = tpu.iota {dimensions = array<i32: 0>} : vector<8x8xi32>
    %16 = vector.broadcast %14 : i32 to vector<8x8xi32>
    %17 = arith.addi %15, %16 : vector<8x8xi32>
    %18 = tpu.iota {dimensions = array<i32: 1>} : vector<8x8xi32>
    %19 = arith.cmpi sgt, %18, %17 : vector<8x8xi32>
    %20 = vector.extract_strided_slice %11 {offsets = [0, 0], sizes = [8, 8], strides = [1, 1]} : vector<8x32xbf16> to vector<8x8xbf16>
    %21 = vector.extract_strided_slice %12 {offsets = [0, 0], sizes = [8, 8], strides = [1, 1]} : vector<8x32xbf16> to vector<8x8xbf16>
    %cst_9 = arith.constant dense<0.000000e+00> : vector<8x8xf32>
    %22 = tpu.matmul %20, %21, %cst_9 {dimension_numbers = #tpu.dot_dimension_numbers<[1], [1], [0], [0], [0, 0, 1, 0], [], []>} : vector<8x8xbf16>, vector<8x8xbf16>, vector<8x8xf32> -> vector<8x8xf32>
    %cst_10 = arith.constant -1.000000e+04 : f32
    %23 = vector.broadcast %cst_10 : f32 to vector<8x8xf32>
    %24 = arith.select %19, %23, %22 : vector<8x8xi1>, vector<8x8xf32>
    %cst_11 = arith.constant dense<0xFF800000> : vector<8xf32>
    %25 = vector.multi_reduction <maximumf>, %24, %cst_11 [1] : vector<8x8xf32> to vector<8xf32>
    %26 = vector.shape_cast %25 : vector<8xf32> to vector<8x1xf32>
    %27 = vector.broadcast %26 : vector<8x1xf32> to vector<8x8xf32>
    %28 = arith.subf %24, %27 : vector<8x8xf32>
    %29 = math.exp %28 : vector<8x8xf32>
    %cst_12 = arith.constant dense<0.000000e+00> : vector<8xf32>
    %30 = vector.multi_reduction <add>, %29, %cst_12 [1] : vector<8x8xf32> to vector<8xf32>
    %31 = vector.shape_cast %30 : vector<8xf32> to vector<8x1xf32>
    %32 = arith.truncf %29 : vector<8x8xf32> to vector<8x8xbf16>
    %33 = vector.extract_strided_slice %13 {offsets = [0, 0], sizes = [8, 8], strides = [1, 1]} : vector<8x32xbf16> to vector<8x8xbf16>
    %cst_13 = arith.constant dense<0.000000e+00> : vector<8x8xf32>
    %34 = tpu.matmul %32, %33, %cst_13 {dimension_numbers = #tpu.dot_dimension_numbers<[1], [0], [0], [1], [0, 0, 1, 1], [], []>} : vector<8x8xbf16>, vector<8x8xbf16>, vector<8x8xf32> -> vector<8x8xf32>
    %35 = tpu.reciprocal %31 {approx = true} : vector<8x1xf32> -> vector<8x1xf32>
    %36 = vector.broadcast %35 : vector<8x1xf32> to vector<8x8xf32>
    %37 = arith.mulf %34, %36 : vector<8x8xf32>
    %c0_14 = arith.constant 0 : index
    %c0_15 = arith.constant 0 : index
    %38 = vector.load %arg11[%c0_14, %c0_15] : memref<8x32xf32, #tpu.memory_space<vmem>>, vector<8x8xf32>
    tpu.vector_store %arg11[%c0_14, %c0_15], %37 {strides = array<i32>} : memref<8x32xf32, #tpu.memory_space<vmem>>, vector<8x8xf32>,
    %39 = vector.extract_strided_slice %11 {offsets = [0, 8], sizes = [8, 8], strides = [1, 1]} : vector<8x32xbf16> to vector<8x8xbf16>
    %40 = vector.extract_strided_slice %12 {offsets = [0, 8], sizes = [8, 8], strides = [1, 1]} : vector<8x32xbf16> to vector<8x8xbf16>
    %cst_16 = arith.constant dense<0.000000e+00> : vector<8x8xf32>
    %41 = tpu.matmul %39, %40, %cst_16 {dimension_numbers = #tpu.dot_dimension_numbers<[1], [1], [0], [0], [0, 0, 1, 0], [], []>} : vector<8x8xbf16>, vector<8x8xbf16>, vector<8x8xf32> -> vector<8x8xf32>
    %cst_17 = arith.constant -1.000000e+04 : f32
    %42 = vector.broadcast %cst_17 : f32 to vector<8x8xf32>
    %43 = arith.select %19, %42, %41 : vector<8x8xi1>, vector<8x8xf32>
    %cst_18 = arith.constant dense<0xFF800000> : vector<8xf32>
    %44 = vector.multi_reduction <maximumf>, %43, %cst_18 [1] : vector<8x8xf32> to vector<8xf32>
    %45 = vector.shape_cast %44 : vector<8xf32> to vector<8x1xf32>
    %46 = vector.broadcast %45 : vector<8x1xf32> to vector<8x8xf32>
    %47 = arith.subf %43, %46 : vector<8x8xf32>
    %48 = math.exp %47 : vector<8x8xf32>
    %cst_19 = arith.constant dense<0.000000e+00> : vector<8xf32>
    %49 = vector.multi_reduction <add>, %48, %cst_19 [1] : vector<8x8xf32> to vector<8xf32>
    %50 = vector.shape_cast %49 : vector<8xf32> to vector<8x1xf32>
    %51 = arith.truncf %48 : vector<8x8xf32> to vector<8x8xbf16>
    %52 = vector.extract_strided_slice %13 {offsets = [0, 8], sizes = [8, 8], strides = [1, 1]} : vector<8x32xbf16> to vector<8x8xbf16>
    %cst_20 = arith.constant dense<0.000000e+00> : vector<8x8xf32>
    %53 = tpu.matmul %51, %52, %cst_20 {dimension_numbers = #tpu.dot_dimension_numbers<[1], [0], [0], [1], [0, 0, 1, 1], [], []>} : vector<8x8xbf16>, vector<8x8xbf16>, vector<8x8xf32> -> vector<8x8xf32>
    %54 = tpu.reciprocal %50 {approx = true} : vector<8x1xf32> -> vector<8x1xf32>
    %55 = vector.broadcast %54 : vector<8x1xf32> to vector<8x8xf32>
    %56 = arith.mulf %53, %55 : vector<8x8xf32>
    %c0_21 = arith.constant 0 : index
    %c8 = arith.constant 8 : index
    %57 = vector.load %arg11[%c0_21, %c8] : memref<8x32xf32, #tpu.memory_space<vmem>>, vector<8x8xf32>
    tpu.vector_store %arg11[%c0_21, %c8], %56 {strides = array<i32>} : memref<8x32xf32, #tpu.memory_space<vmem>>, vector<8x8xf32>,
    %58 = vector.extract_strided_slice %11 {offsets = [0, 16], sizes = [8, 8], strides = [1, 1]} : vector<8x32xbf16> to vector<8x8xbf16>
    %59 = vector.extract_strided_slice %12 {offsets = [0, 16], sizes = [8, 8], strides = [1, 1]} : vector<8x32xbf16> to vector<8x8xbf16>
    %cst_22 = arith.constant dense<0.000000e+00> : vector<8x8xf32>
    %60 = tpu.matmul %58, %59, %cst_22 {dimension_numbers = #tpu.dot_dimension_numbers<[1], [1], [0], [0], [0, 0, 1, 0], [], []>} : vector<8x8xbf16>, vector<8x8xbf16>, vector<8x8xf32> -> vector<8x8xf32>
    %cst_23 = arith.constant -1.000000e+04 : f32
    %61 = vector.broadcast %cst_23 : f32 to vector<8x8xf32>
    %62 = arith.select %19, %61, %60 : vector<8x8xi1>, vector<8x8xf32>
    %cst_24 = arith.constant dense<0xFF800000> : vector<8xf32>
    %63 = vector.multi_reduction <maximumf>, %62, %cst_24 [1] : vector<8x8xf32> to vector<8xf32>
    %64 = vector.shape_cast %63 : vector<8xf32> to vector<8x1xf32>
    %65 = vector.broadcast %64 : vector<8x1xf32> to vector<8x8xf32>
    %66 = arith.subf %62, %65 : vector<8x8xf32>
    %67 = math.exp %66 : vector<8x8xf32>
    %cst_25 = arith.constant dense<0.000000e+00> : vector<8xf32>
    %68 = vector.multi_reduction <add>, %67, %cst_25 [1] : vector<8x8xf32> to vector<8xf32>
    %69 = vector.shape_cast %68 : vector<8xf32> to vector<8x1xf32>
    %70 = arith.truncf %67 : vector<8x8xf32> to vector<8x8xbf16>
    %71 = vector.extract_strided_slice %13 {offsets = [0, 16], sizes = [8, 8], strides = [1, 1]} : vector<8x32xbf16> to vector<8x8xbf16>
    %cst_26 = arith.constant dense<0.000000e+00> : vector<8x8xf32>
    %72 = tpu.matmul %70, %71, %cst_26 {dimension_numbers = #tpu.dot_dimension_numbers<[1], [0], [0], [1], [0, 0, 1, 1], [], []>} : vector<8x8xbf16>, vector<8x8xbf16>, vector<8x8xf32> -> vector<8x8xf32>
    %73 = tpu.reciprocal %69 {approx = true} : vector<8x1xf32> -> vector<8x1xf32>
    %74 = vector.broadcast %73 : vector<8x1xf32> to vector<8x8xf32>
    %75 = arith.mulf %72, %74 : vector<8x8xf32>
    %c0_27 = arith.constant 0 : index
    %c16 = arith.constant 16 : index
    %76 = vector.load %arg11[%c0_27, %c16] : memref<8x32xf32, #tpu.memory_space<vmem>>, vector<8x8xf32>
    tpu.vector_store %arg11[%c0_27, %c16], %75 {strides = array<i32>} : memref<8x32xf32, #tpu.memory_space<vmem>>, vector<8x8xf32>,
    %77 = vector.extract_strided_slice %11 {offsets = [0, 24], sizes = [8, 8], strides = [1, 1]} : vector<8x32xbf16> to vector<8x8xbf16>
    %78 = vector.extract_strided_slice %12 {offsets = [0, 24], sizes = [8, 8], strides = [1, 1]} : vector<8x32xbf16> to vector<8x8xbf16>
    %cst_28 = arith.constant dense<0.000000e+00> : vector<8x8xf32>
    %79 = tpu.matmul %77, %78, %cst_28 {dimension_numbers = #tpu.dot_dimension_numbers<[1], [1], [0], [0], [0, 0, 1, 0], [], []>} : vector<8x8xbf16>, vector<8x8xbf16>, vector<8x8xf32> -> vector<8x8xf32>
    %cst_29 = arith.constant -1.000000e+04 : f32
    %80 = vector.broadcast %cst_29 : f32 to vector<8x8xf32>
    %81 = arith.select %19, %80, %79 : vector<8x8xi1>, vector<8x8xf32>
    %cst_30 = arith.constant dense<0xFF800000> : vector<8xf32>
    %82 = vector.multi_reduction <maximumf>, %81, %cst_30 [1] : vector<8x8xf32> to vector<8xf32>
    %83 = vector.shape_cast %82 : vector<8xf32> to vector<8x1xf32>
    %84 = vector.broadcast %83 : vector<8x1xf32> to vector<8x8xf32>
    %85 = arith.subf %81, %84 : vector<8x8xf32>
    %86 = math.exp %85 : vector<8x8xf32>
    %cst_31 = arith.constant dense<0.000000e+00> : vector<8xf32>
    %87 = vector.multi_reduction <add>, %86, %cst_31 [1] : vector<8x8xf32> to vector<8xf32>
    %88 = vector.shape_cast %87 : vector<8xf32> to vector<8x1xf32>
    %89 = arith.truncf %86 : vector<8x8xf32> to vector<8x8xbf16>
    %90 = vector.extract_strided_slice %13 {offsets = [0, 24], sizes = [8, 8], strides = [1, 1]} : vector<8x32xbf16> to vector<8x8xbf16>
    %cst_32 = arith.constant dense<0.000000e+00> : vector<8x8xf32>
    %91 = tpu.matmul %89, %90, %cst_32 {dimension_numbers = #tpu.dot_dimension_numbers<[1], [0], [0], [1], [0, 0, 1, 1], [], []>} : vector<8x8xbf16>, vector<8x8xbf16>, vector<8x8xf32> -> vector<8x8xf32>
    %92 = tpu.reciprocal %88 {approx = true} : vector<8x1xf32> -> vector<8x1xf32>
    %93 = vector.broadcast %92 : vector<8x1xf32> to vector<8x8xf32>
    %94 = arith.mulf %91, %93 : vector<8x8xf32>
    %c0_33 = arith.constant 0 : index
    %c24 = arith.constant 24 : index
    %95 = vector.load %arg11[%c0_33, %c24] : memref<8x32xf32, #tpu.memory_space<vmem>>, vector<8x8xf32>
    tpu.vector_store %arg11[%c0_33, %c24], %94 {strides = array<i32>} : memref<8x32xf32, #tpu.memory_space<vmem>>, vector<8x8xf32>,
    %c0_34 = arith.constant 0 : index
    %c0_35 = arith.constant 0 : index
    %96 = vector.load %arg11[%c0_34, %c0_35] : memref<8x32xf32, #tpu.memory_space<vmem>>, vector<8x32xf32>
    %97 = arith.truncf %96 : vector<8x32xf32> to vector<8x32xbf16>
    %c0_36 = arith.constant 0 : index
    %c0_37 = arith.constant 0 : index
    %98 = vector.load %arg6[%c0_36, %c0_37] : memref<32x32xbf16, #tpu.memory_space<vmem>>, vector<32x32xbf16>
    %cst_38 = arith.constant dense<0.000000e+00> : vector<8x32xf32>
    %99 = tpu.matmul %97, %98, %cst_38 {dimension_numbers = #tpu.dot_dimension_numbers<[1], [0], [0], [1], [0, 0, 1, 1], [], []>} : vector<8x32xbf16>, vector<32x32xbf16>, vector<8x32xf32> -> vector<8x32xf32>
    %c0_39 = arith.constant 0 : index
    %c0_40 = arith.constant 0 : index
    %100 = vector.load %arg7[%c0_39, %c0_40] : memref<1x32xf32, #tpu.memory_space<vmem>>, vector<1x32xf32>
    %101 = vector.broadcast %100 : vector<1x32xf32> to vector<8x32xf32>
    %102 = arith.addf %99, %101 : vector<8x32xf32>
    %103 = arith.addf %102, %3 : vector<8x32xf32>
    %c0_41 = arith.constant 0 : index
    %c0_42 = arith.constant 0 : index
    %104 = vector.load %arg8[%c0_41, %c0_42] : memref<1x32xf32, #tpu.memory_space<vmem>>, vector<1x32xf32>
    %c0_43 = arith.constant 0 : index
    %c0_44 = arith.constant 0 : index
    %105 = vector.load %arg9[%c0_43, %c0_44] : memref<1x32xf32, #tpu.memory_space<vmem>>, vector<1x32xf32>
    %cst_45 = arith.constant dense<0.000000e+00> : vector<8xf32>
    %106 = vector.multi_reduction <add>, %103, %cst_45 [1] : vector<8x32xf32> to vector<8xf32>
    %107 = vector.shape_cast %106 : vector<8xf32> to vector<8x1xf32>
    %cst_46 = arith.constant 3.200000e+01 : f32
    %108 = vector.broadcast %cst_46 : f32 to vector<8x1xf32>
    %109 = arith.divf %107, %108 : vector<8x1xf32>
    %110 = vector.broadcast %109 : vector<8x1xf32> to vector<8x32xf32>
    %111 = arith.subf %103, %110 : vector<8x32xf32>
    %112 = arith.mulf %111, %111 : vector<8x32xf32>
    %cst_47 = arith.constant dense<0.000000e+00> : vector<8xf32>
    %113 = vector.multi_reduction <add>, %112, %cst_47 [1] : vector<8x32xf32> to vector<8xf32>
    %114 = vector.shape_cast %113 : vector<8xf32> to vector<8x1xf32>
    %cst_48 = arith.constant 3.200000e+01 : f32
    %115 = vector.broadcast %cst_48 : f32 to vector<8x1xf32>
    %116 = arith.divf %114, %115 : vector<8x1xf32>
    %117 = vector.broadcast %109 : vector<8x1xf32> to vector<8x32xf32>
    %118 = arith.subf %103, %117 : vector<8x32xf32>
    %119 = vector.broadcast %104 : vector<1x32xf32> to vector<8x32xf32>
    %120 = arith.mulf %119, %118 : vector<8x32xf32>
    %cst_49 = arith.constant 9.99999996E-13 : f32
    %121 = vector.broadcast %cst_49 : f32 to vector<8x1xf32>
    %122 = arith.addf %116, %121 : vector<8x1xf32>
    %123 = math.rsqrt %122 : vector<8x1xf32>
    %124 = vector.broadcast %123 : vector<8x1xf32> to vector<8x32xf32>
    %125 = arith.mulf %120, %124 : vector<8x32xf32>
    %126 = vector.broadcast %105 : vector<1x32xf32> to vector<8x32xf32>
    %127 = arith.addf %125, %126 : vector<8x32xf32>
    %c0_50 = arith.constant 0 : index
    %c0_51 = arith.constant 0 : index
    %c0_52 = arith.constant 0 : index
    %128 = vector.load %arg10[%c0_50, %c0_51, %c0_52] : memref<1x8x32xf32, #tpu.memory_space<vmem>>, vector<1x8x32xf32>
    %129 = vector.shape_cast %128 : vector<1x8x32xf32> to vector<8x32xf32>
    %130 = vector.shape_cast %127 : vector<8x32xf32> to vector<1x8x32xf32>
    tpu.vector_store %arg10[%c0_50, %c0_51, %c0_52], %130 {strides = array<i32>} : memref<1x8x32xf32, #tpu.memory_space<vmem>>, vector<1x8x32xf32>,
    return
  }
  func.func @transform_0(%arg0: i32, %arg1: i32) -> (i32, i32, i32) {
    %c0_i32 = arith.constant 0 : i32
    %c0_i32_0 = arith.constant 0 : i32
    return %arg0, %arg1, %c0_i32 : i32, i32, i32
  }
  func.func @transform_1(%arg0: i32, %arg1: i32) -> (i32, i32, i32) {
    %c0_i32 = arith.constant 0 : i32
    %c0_i32_0 = arith.constant 0 : i32
    %c0_i32_1 = arith.constant 0 : i32
    return %arg0, %c0_i32, %c0_i32_0 : i32, i32, i32
  }
  func.func @transform_2(%arg0: i32, %arg1: i32) -> (i32, i32) {
    %c0_i32 = arith.constant 0 : i32
    %c0_i32_0 = arith.constant 0 : i32
    %c0_i32_1 = arith.constant 0 : i32
    return %c0_i32, %c0_i32_0 : i32, i32
  }
  func.func @transform_3(%arg0: i32, %arg1: i32) -> (i32, i32) {
    %c0_i32 = arith.constant 0 : i32
    %c0_i32_0 = arith.constant 0 : i32
    %c0_i32_1 = arith.constant 0 : i32
    return %c0_i32, %c0_i32_0 : i32, i32
  }
  func.func @transform_4(%arg0: i32, %arg1: i32) -> (i32, i32) {
    %c0_i32 = arith.constant 0 : i32
    %c0_i32_0 = arith.constant 0 : i32
    %c0_i32_1 = arith.constant 0 : i32
    return %c0_i32, %c0_i32_0 : i32, i32
  }
  func.func @transform_5(%arg0: i32, %arg1: i32) -> (i32, i32) {
    %c0_i32 = arith.constant 0 : i32
    %c0_i32_0 = arith.constant 0 : i32
    %c0_i32_1 = arith.constant 0 : i32
    return %c0_i32, %c0_i32_0 : i32, i32
  }
  func.func @transform_6(%arg0: i32, %arg1: i32) -> (i32, i32) {
    %c0_i32 = arith.constant 0 : i32
    %c0_i32_0 = arith.constant 0 : i32
    %c0_i32_1 = arith.constant 0 : i32
    return %c0_i32, %c0_i32_0 : i32, i32
  }
  func.func @transform_7(%arg0: i32, %arg1: i32) -> (i32, i32) {
    %c0_i32 = arith.constant 0 : i32
    %c0_i32_0 = arith.constant 0 : i32
    %c0_i32_1 = arith.constant 0 : i32
    return %c0_i32, %c0_i32_0 : i32, i32
  }
  func.func @transform_8(%arg0: i32, %arg1: i32) -> (i32, i32, i32) {
    %c0_i32 = arith.constant 0 : i32
    %c0_i32_0 = arith.constant 0 : i32
    return %arg0, %arg1, %c0_i32 : i32, i32, i32
  }
}

</mosaic_0001>

<bundles_post_ra>
// kernel: tpu_custom_call.1
= control target key start
LH: loop header
LB: loop body
LE: loop exit
PB: predicated region body
PF: predicated region fallthrough
CT: control target
= control target key end

     0   :  { %6 = vsyncpa [#allocation3], 0  ;;  %s453_s0 = inlined_call_operand.hbm [shape: f32[8,128], index: 0, kind: input, shape index: {}]   ;;  %s454_s1 = inlined_call_operand.hbm [shape: f32[16,128], index: 1, kind: output, shape index: {}]  }
   0x1   :  { %7 = vsyncpa [#allocation4], 0 }
   0x2   :  { %9 = vsyncpa [#allocation4 + $0x1], 0  ;;  %s347_s6 = smov 0   ;;  %s349_s7 = smov 0  }
   0x3   :  { %s351_s8 = smov 0   ;;  %s353_s9 = smov 0  }
   0x4 LB: > { %s368_s10 = sadd.s32 4294967295, %s333_s9   ;;  %s183_s11 = sadd.s32 4294967294, %s333_s9   ;;  %s333_s9 = sphi %s353_s9, %s462_s9   ;;  %s329_s8 = sphi %s351_s8, %s461_s8   ;;  %s325_s7 = sphi %s349_s7, %s460_s7   ;;  %s321_s6 = sphi %s347_s6, %s459_s6  }
   0x5   : > { %s372_s12 = sadd.s32 1, %s333_s9   ;;  %s43_s13 = sadd.s32 1, %s329_s8 }
   0x6   : > { %s40_s14 = ssub.s32 %s333_s9, %s372_s12  ;;  %p53_p0 = scmp.ne.s32.totalorder %s329_s8, %s325_s7 }
   0x7   : > { %p41_p1 = scmp.eq.s32.totalorder %s40_s14, 0  ;;  %p54_p2 = scmp.eq.s32.totalorder %s368_s10, 1 }
   0x8   : > { %p59_p3 = scmp.ne.s32.totalorder %s325_s7, %s321_s6  ;;  %p60_p4 = scmp.eq.s32.totalorder %s183_s11, 1 }
   0x9   : > { %s383_s15 = scalar_select %p41_p1, %s329_s8, %s43_s13  }
   0xa   : > { %p385_p5 = por %p54_p2, %p53_p0  ;;  %p389_p6 = por %p60_p4, %p59_p3 }
   0xb   : > { %p184_p7 = scmp.ge.s32.totalorder %s333_s9, 1  ;;  %p67_p8 = scmp.lt.s32.totalorder %s333_s9, 3 }
   0xc   : > { %s456_s17 = scalar_select %p389_p6, 1, 0 }
   0xd   : > { %p207_p9 = scmp.eq.s32.totalorder %s368_s10, 0  ;;  %p396_p10 = pnand %p184_p7, %p67_p8 }
   0xe   : > { %s335_s19 = smov [#allocation2]  }
   0xf   : > { %s80_s20 = sshll.u32 %s335_s19, 4  ;;  %p199_p11 = pneg %p396_p10  ;;  %s81_s20 = int_to_ptr.vmem [resolvable:$true] %s80_s20 }
  0x10   : > { %s254_s21 = scalar_lea.vmem %s81_s20, 128  ;;  %p262_p3 = scmp.lt.s32.totalorder %s81_s20, %s81_s20 }
  0x11   : > { %p200_p12 = pnand %p207_p9, %p199_p11  ;;  %p255_p0 = scmp.ne.s32.totalorder %s81_s20, %s254_s21 }
  0x12   : > { %p263_p4 = scmp.lt.s32.totalorder %s254_s21, %s254_s21 }
  0x13   : > { %p245_p13 = pneg %p200_p12 }
  0x14   : > { %p264_p6 = por %p263_p4, %p262_p3 }
  0x15   : > { %p257_p1 = pnand %p255_p0, %p245_p13 }
  0x17   : > { %p258_p2 = pneg %p257_p1 }
  0x19   : > { %p265_p7 = pnand %p264_p6, %p258_p2 }
  0x1b   : > { %268 = shalt.err (!%p265_p7)
}
  0x1c   : > { %202 = dma.hbm_to_vmem [thread:$0]  (!%p200_p12), %s453_s0, 128, %s81_s20, [#allocation3]  }
  0x1d   : > { %93 = sbr.rel (%p396_p10) target bundleno = 60 (0x3c), region = 24 }
  0x22   : > { %312 = dma.done.wait (%p207_p9), [#allocation3], 128  }
  0x23   : > { %314 = vsyncadd (%p207_p9), [#allocation3], 4294967168  ;;  %s105_s24 = sand.u32 1, %s325_s7   ;;  %s190_s28 = sshll.u32 %s368_s10, 7  ;;  %v108_v0 = vld [vmem:[#allocation2] sm:$0xff] }
  0x24   : > { %s188_s25 = sshll.u32 %s105_s24, 3  ;;  %s122_s2 = scalar_lea.hbm %s454_s1, %s190_s28 }
  0x25   : > { %s107_s26 = scalar_lea.vmem [#allocation5], %s188_s25  ;;  %s111_s3 = scalar_lea.sflag [#allocation4], %s105_s24 }
  0x26   : > { %s124_s27 = sshll.u32 %s107_s26, 4  ;;  %109 = vst [vmem:[%s107_s26] sm:$0xff] %v108_v0  ;;  %s336_s5 = smov [#allocation5]   ;;  %s415_s27 = int_to_ptr.vmem [resolvable:$true] %s124_s27 }
  0x27   : > { %s269_s4 = scalar_lea.vmem %s415_s27, 128  ;;  %s273_s11 = sshll.u32 %s336_s5, 4  ;;  %s274_s11 = int_to_ptr.vmem [resolvable:$false] %s273_s11 }
  0x28   : > { %p270_p6 = scmp.ne.s32.totalorder %s415_s27, %s269_s4  ;;  %s275_s10 = scalar_lea.vmem %s274_s11, 256 }
  0x29   : > { %p276_p10 = scmp.lt.s32.totalorder %s415_s27, %s274_s11  ;;  %p277_p11 = scmp.lt.s32.totalorder %s275_s10, %s269_s4 }
  0x2a   : > { %p271_p8 = pnand %p270_p6, %p385_p5 }
  0x2b   : > { %p278_p12 = por %p277_p11, %p276_p10 }
  0x2c   : > { %p272_p9 = pneg %p271_p8 }
  0x2e   : > { %p279_p13 = pnand %p278_p12, %p272_p9 }
  0x30   : > { %282 = shalt.err (!%p279_p13)
}
  0x31   : > { %s283_s13 = scalar_lea.hbm %s122_s2, 128  ;;  %s287_s19 = scalar_lea.hbm %s454_s1, 256 }
  0x32   : > { %p284_p0 = scmp.ne.s32.totalorder %s122_s2, %s283_s13  ;;  %p288_p3 = scmp.lt.s32.totalorder %s122_s2, %s454_s1 }
  0x33   : > { %p289_p4 = scmp.lt.s32.totalorder %s287_s19, %s283_s13 }
  0x34   : > { %p285_p1 = pnand %p284_p0, %p385_p5 }
  0x35   : > { %p290_p7 = por %p289_p4, %p288_p3 }
  0x36   : > { %p286_p2 = pneg %p285_p1 }
  0x38   : > { %p291_p6 = pnand %p290_p7, %p286_p2 }
  0x3a   : > { %294 = shalt.err (!%p291_p6)
}
  0x3b   : > { %197 = dma.vmem_to_hbm [thread:$0]  (%p385_p5), %s415_s27, 128, %s122_s2, %s111_s3  }
  0x3c PF: > { %p209_p8 = scmp.ge.s32.totalorder %s333_s9, 2  ;;  %s136_s22 = sand.u32 1, %s321_s6  }
  0x3d   : > { %p458_p9 = scmp.ne.s32.totalorder %s456_s17, 0  ;;  %s137_s23 = scalar_lea.sflag [#allocation4], %s136_s22 }
  0x3f   : > { %p204_p10 = pnand %p209_p8, %p458_p9 }
  0x41   : > { %p205_p11 = pneg %p204_p10 }
  0x43   : > { %316 = dma.done.wait (%p205_p11), %s137_s23, 128  }
  0x44   : > { %318 = vsyncadd (%p205_p11), %s137_s23, 4294967168  ;;  %p12_p12 = scmp.ge.s32.totalorder %s372_s12, 4   ;;  %s459_s6 = smov %s325_s7 }
  0x45   : > { %s460_s7 = smov %s329_s8  ;;  %s461_s8 = smov %s383_s15 }
  0x46   : > { %s462_s9 = smov %s372_s12  ;;  %14 = sbr.rel (!%p12_p12) target bundleno = 4 (0x4), region = 61 }
  0x4b   :  { %142 = vsyncpa [#allocation3], 1 }
  0x4c   :  { %144 = vsyncpa [#allocation3 + $0x1], 1 }
  0x4d   :  { %145 = vsyncpa [#allocation4], 1 }
  0x4e   :  { %147 = vsyncpa [#allocation4 + $0x1], 1 }

// kernel: decoder_layer.5
= control target key start
LH: loop header
LB: loop body
LE: loop exit
PB: predicated region body
PF: predicated region fallthrough
CT: control target
= control target key end

     0   :  { %v328_v1 = vmov 0.0   ;;  %vm329_vm0 = vmmov 0   ;;  %vm54_vm1 = vcmask 261120   ;;  %s419_s0 = inlined_call_operand.vmem [shape: f32[16,32], index: 0, kind: input, shape index: {}]   ;;  %s420_s1 = inlined_call_operand.vmem [shape: bf16[32,64], index: 1, kind: input, shape index: {}]   ;;  %s421_s2 = inlined_call_operand.vmem [shape: f32[1,64], index: 2, kind: input, shape index: {}]   ;;  %s422_s3 = inlined_call_operand.vmem [shape: bf16[64,32], index: 3, kind: input, shape index: {}]   ;;  %s423_s4 = inlined_call_operand.vmem [shape: f32[1,32], index: 4, kind: input, shape index: {}]   ;;  %s424_s5 = inlined_call_operand.vmem [shape: f32[1,32], index: 5, kind: input, shape index: {}]   ;;  %s425_s6 = inlined_call_operand.vmem [shape: f32[1,32], index: 6, kind: input, shape index: {}]   ;;  %s426_s7 = inlined_call_operand.hbm [shape: f32[16,32], index: 7, kind: output, shape index: {}]  }
   0x1   :  { %v296_v0 = vld [vmem:[%s420_s1 + $0x8] sm:$0xff]   ;;  %271 = vmatprep.subr.bf16.mxu0 %v328_v1  ;;  %v297_v2 = vld [vmem:[%s420_s1] sm:$0xff]   ;;  %279 = vmatprep.subr.bf16.mxu1 %v328_v1  ;;  %v298_v5 = vld [vmem:[%s422_s3 + $0x18] sm:$0xff]  }
   0x2   :  { %272 = vmatpush3.bf16.msra.mxu0 %v296_v0  ;;  %275 = vmatprep.mubr.msk.bf16.mxu0 %vm329_vm0, %v328_v1  ;;  %v28_v3 = vld [vmem:[%s419_s0] sm:$0xff]  ;;  %v29_v4 = vld [vmem:[%s419_s0 + $0x8] sm:$0xff] }
   0x3   :  { %273 = vmatprep.subr.bf16.mxu0 %v328_v1  ;;  %287 = vmatprep.mubr.msk.bf16.mxu1 %vm329_vm0, %v328_v1  ;;  %v30_v6 = vpack.c.bf16 %v29_v4, %v28_v3 }
   0x4   :  { %280 = vmatpush3.bf16.msra.mxu1 %v298_v5 }
   0x5   :  { %281 = vmatprep.subr.bf16.mxu1 %v328_v1 }
   0x6   :  { %274 = vmatpush3.bf16.msra.mxu0 %v297_v2 }
   0x7   :  { %12 = vsyncpa [#allocation3], 0  ;;  %v299_v7 = vld [vmem:[%s422_s3 + $0x10] sm:$0xff]   ;;  %v300_v8 = vld [vmem:[%s422_s3 + $0x8] sm:$0xff]   ;;  %vm141_vm2 = vcmask 523264   ;;  %s330_s20 = smov [#allocation2]  }
   0x8   :  { %282 = vmatpush3.bf16.msra.mxu1 %v299_v7  ;;  %v301_v9 = vld [vmem:[%s422_s3] sm:$0xff]   ;;  %s240_s21 = sshll.u32 %s330_s20, 4  ;;  %s241_s21 = int_to_ptr.vmem [resolvable:$true] %s240_s21 }
   0x9   :  { %276 = vmatmul.mubr.msk.bf16.vlgmr.msra.gmra.mxu0 %vm54_vm1, %v30_v6  ;;  %283 = vmatprep.subr.bf16.mxu1 %v328_v1  ;;  %v251_v10 = vld [vmem:[%s421_s2] ss:$0 sm:$0xff]  ;;  %p311_p1 = scmp.lt.s32.totalorder %s241_s21, %s241_s21 }
   0xa   :  { %v255_v20 = vld [vmem:[%s423_s4] ss:$0 sm:$0xff] }
   0xb   :  { %v261_v47 = vld [vmem:[%s424_s5] ss:$0 sm:$0xff]  ;;  %s306_s5 = scalar_lea.vmem %s241_s21, 256 }
   0xc   :  { %284 = vmatpush3.bf16.msra.mxu1 %v300_v8  ;;  %v262_v50 = vld [vmem:[%s425_s6] ss:$0 sm:$0xff]  ;;  %p307_p0 = scmp.ne.s32.totalorder %s241_s21, %s306_s5  ;;  %p312_p2 = scmp.lt.s32.totalorder %s306_s5, %s306_s5 }
   0xd   :  { %285 = vmatprep.subr.bf16.mxu1 %v328_v1 }
   0xe   :  { %p313_p3 = por %p312_p2, %p311_p1 }
  0x10   :  { %286 = vmatpush3.bf16.msra.mxu1 %v301_v9  ;;  %p314_p4 = pnand %p313_p3, %p307_p0 }
  0xc9   :  { %v92_v11 = vpop.f32.mrf.mxu0 }
  0xca   :  { %v93_v13 = vadd.f32 %v251_v10, %v92_v11 }
  0xcb   :  { %v277_v12 = vpop.f32.mrf.mxu0 }
  0xcc   :  { %v99_v17 = vmax.f32 %v93_v13, 0.0 }
  0xcd   :  { %v95_v14 = vpop.f32.mrf.mxu0 }
  0xce   :  { %v96_v15 = vadd.f32 %v251_v10, %v95_v14 }
  0xcf   :  { %v278_v16 = vpop.f32.mrf.mxu0 }
  0xd0   :  { %v100_v18 = vmax.f32 %v96_v15, 0.0 }
  0xd2   :  { %v101_v19 = vpack.c.bf16 %v100_v18, %v99_v17 }
  0xd4   :  { %288 = vmatmul.mubr.msk.bf16.vlgmr.msra.gmra.mxu1 %vm141_vm2, %v101_v19 }
 0x194   :  { %v179_v21 = vpop.f32.mrf.mxu1 }
 0x195   :  { %v180_v22 = vadd.f32 %v255_v20, %v179_v21 }
 0x196   :  { %v289_v23 = vpop.f32.mrf.mxu1 }
 0x197   :  { %v186_v24 = vadd.f32 %v180_v22, %v28_v3 }
 0x198   :  { %v182_v25 = vpop.f32.mrf.mxu1 }
 0x199   :  { %v183_v26 = vadd.f32 %v255_v20, %v182_v25  ;;  %v190_v27 = vsel %vm54_vm1, %v186_v24, 0.0 }
 0x19a   :  { %191 = vadd.xlane.f32.xlu0 %v190_v27  ;;  %v290_v28 = vpop.f32.mrf.mxu1 }
 0x19b   :  { %v187_v29 = vadd.f32 %v183_v26, %v29_v4 }
 0x19d   :  { %v193_v30 = vsel %vm54_vm1, %v187_v29, 0.0 }
 0x19e   :  { %194 = vadd.xlane.f32.xlu0 %v193_v30 }
 0x223   :  { %v192_v31 = vpop.xlane.xlu0 %191 }
 0x224   :  { %v197_v32 = vmul.f32 0.03125, %v192_v31 }
 0x226   :  { %v199_v33 = vsub.f32 %v186_v24, %v197_v32 }
 0x227   :  { %v195_v34 = vpop.xlane.xlu0 %194 }
 0x228   :  { %v198_v35 = vmul.f32 0.03125, %v195_v34  ;;  %v201_v36 = vmul.f32 %v199_v33, %v199_v33  ;;  %v217_v48 = vmul.f32 %v261_v47, %v199_v33 }
 0x22a   :  { %v200_v37 = vsub.f32 %v187_v29, %v198_v35  ;;  %v203_v38 = vsel %vm54_vm1, %v201_v36, 0.0 }
 0x22b   :  { %204 = vadd.xlane.f32.xlu1 %v203_v38 }
 0x22c   :  { %v202_v39 = vmul.f32 %v200_v37, %v200_v37  ;;  %v218_v52 = vmul.f32 %v261_v47, %v200_v37 }
 0x22e   :  { %v206_v40 = vsel %vm54_vm1, %v202_v39, 0.0 }
 0x22f   :  { %207 = vadd.xlane.f32.xlu1 %v206_v40 }
 0x2b4   :  { %v205_v41 = vpop.xlane.xlu1 %204 }
 0x2b5   :  { %v209_v42 = vmul.f32 0.03125, %v205_v41 }
 0x2b7   :  { %v219_v43 = vadd.f32 1e-12, %v209_v42 }
 0x2b8   :  { %v208_v44 = vpop.xlane.xlu1 %207 }
 0x2b9   :  { %302 = vrsqrt.f32 %v219_v43  ;;  %v210_v45 = vmul.f32 0.03125, %v208_v44 }
 0x2bb   :  { %v220_v46 = vadd.f32 1e-12, %v210_v45 }
 0x2bd   :  { %304 = vrsqrt.f32 %v220_v46 }
 0x2c6   :  { %v303_v49 = vpop.eup %302 }
 0x2c7   :  { %v223_v51 = vmul.f32 %v303_v49, %v217_v48 }
 0x2c9   :  { %v231_v53 = vadd.f32 %v262_v50, %v223_v51 }
 0x2ca   :  { %v305_v54 = vpop.eup %304 }
 0x2cb   :  { %v224_v55 = vmul.f32 %v305_v54, %v218_v52  ;;  %233 = vst.msk [vmem:[#allocation2] sm:$0xff] %vm54_vm1, %v231_v53 }
 0x2cd   :  { %v232_v56 = vadd.f32 %v262_v50, %v224_v55 }
 0x2cf   :  { %234 = vst.msk [vmem:[#allocation2 + $0x8] sm:$0xff] %vm54_vm1, %v232_v56 }
 0x2d0   :  { %317 = shalt.err (!%p314_p4)
}
 0x2d1   :  { %s331_s6 = smov 128   ;;  %s332_s22 = smov 8  }
 0x2d2   :  { %246 = dma.vmem_to_hbm [thread:$0]  %s241_s21, 256, %s426_s7, [#allocation3], %s331_s6, %s331_s6, %s332_s22  }
 0x2d3   :  { %326 = dma.done.wait [#allocation3], 256  }
 0x2d4   :  { %327 = vsyncadd [#allocation3], 4294967040 }
 0x2d5   :  { %250 = vsyncpa [#allocation3], 1 }

// kernel: decoder_layer.4
= control target key start
LH: loop header
LB: loop body
LE: loop exit
PB: predicated region body
PF: predicated region fallthrough
CT: control target
= control target key end

     0   :  { %s1462_s30 = smov 0   ;;  %s1464_s10 = smov 0   ;;  %s1602_s0 = inlined_call_operand.vmem [shape: f32[2,8,32], index: 0, kind: input, shape index: {}]   ;;  %s1603_s1 = inlined_call_operand.vmem [shape: f32[2,8,32], index: 1, kind: input, shape index: {}]   ;;  %s1604_s2 = inlined_call_operand.vmem [shape: f32[2,8,32], index: 2, kind: input, shape index: {}]   ;;  %s1605_s3 = inlined_call_operand.vmem [shape: bf16[32,96], index: 3, kind: input, shape index: {}]   ;;  %s1606_s4 = inlined_call_operand.vmem [shape: f32[1,96], index: 4, kind: input, shape index: {}]   ;;  %s1607_s5 = inlined_call_operand.vmem [shape: bf16[32,32], index: 5, kind: input, shape index: {}]   ;;  %s1608_s6 = inlined_call_operand.vmem [shape: f32[1,32], index: 6, kind: input, shape index: {}]   ;;  %s1609_s7 = inlined_call_operand.vmem [shape: f32[1,32], index: 7, kind: input, shape index: {}]   ;;  %s1610_s8 = inlined_call_operand.vmem [shape: f32[1,32], index: 8, kind: input, shape index: {}]   ;;  %s1611_s9 = inlined_call_operand.vmem [shape: f32[2,8,32], index: 9, kind: output, shape index: {}]  }
   0x1   :  { %s1466_s11 = smov 0  }
   0x2 LB: > { %s31_s12 = sadd.s32 1, %s1394_s10  ;;  %p1195_p0 = scmp.ge.s32.totalorder %s1398_s11, 1  ;;  %s1398_s11 = sphi %s1466_s11, %s19_s11   ;;  %s1394_s10 = sphi %s1464_s10, %s1613_s10   ;;  %s1390_s30 = sphi %s1462_s30, %s1612_s30  }
   0x3   : > { %p33_p1 = scmp.ge.s32.totalorder %s31_s12, 2  ;;  %p328_p2 = scmp.lt.s32.totalorder %s1398_s11, 3 }
   0x5   : > { %s1615_s12 = smov (%p33_p1, %s31_s12), 0  ;;  %p329_p3 = pnand %p1195_p0, %p328_p2 }
   0x6   : > { %s1400_s15 = smov (!%p329_p3), 96   ;;  %p379_p4 = scmp.lt.s32.totalorder (!%p329_p3), %s1390_s30, 1 }
   0x7   : > { %332 = sbr.rel (%p329_p3) target bundleno = 1651 (0x673), region = 56  ;;  %s1403_s27 = smov (!%p329_p3), 120  }
   0x8   : > { %s1404_s28 = smov (!%p329_p3), 112   ;;  %s1405_s29 = smov (!%p329_p3), 104  }
   0x9   : > { %s1407_s13 = smov (!%p329_p3), 80   ;;  %s1408_s14 = smov (!%p329_p3), 72  }
   0xa   : > { %s1410_s21 = smov (!%p329_p3), 16   ;;  %s1411_s22 = smov (!%p329_p3), 24  }
   0xc   : > { %v1354_v0 = vld [vmem:[%s1605_s3 + $0x8] sm:$0xff]   ;;  %v1355_v1 = vld [vmem:[%s1605_s3] sm:$0xff]   ;;  %v1401_v2 = vmov 0.0   ;;  %vm1402_vm0 = vmmov 0   ;;  %s1617_s30 = smov (!%p379_p4, %s1390_s30), 1  ;;  %vm432_vm1 = vcmask 261120  }
   0xd   : > { %479 = vrot.lane.b32.xlu0 %v1354_v0, %s1400_s15  ;;  %1246 = vmatprep.subr.bf16.mxu0 %v1401_v2  ;;  %v1200_v3 = vld [vmem:[%s1606_s4] ss:$0 sm:$0xff]  ;;  %s1499_s20 = sshll.u32 %s1617_s30, 3  ;;  %vm531_vm2 = vcmask 64512   ;;  %s1406_s30 = smov 88   ;;  %vm594_vm3 = vcmask 1043456  }
   0xe   : > { %1254 = vmatprep.subr.bf16.mxu1 %v1401_v2  ;;  %1247 = vmatpush3.bf16.msra.mxu0 %v1354_v0  ;;  %s385_s23 = scalar_lea.vmem %s1602_s0, %s1499_s20  ;;  %s389_s26 = scalar_lea.vmem %s1603_s1, %s1499_s20  ;;  %vm756_vm4 = vcmask 130112   ;;  %vm872_vm5 = vcmask 195712   ;;  %vm988_vm6 = vcmask 261312  }
   0xf   : > { %1248 = vmatprep.subr.bf16.mxu0 %v1401_v2  ;;  %1250 = vmatprep.mubr.msk.bf16.mxu0 %vm1402_vm0, %v1401_v2  ;;  %v405_v4 = vld [vmem:[%s385_s23] sm:$0xff]  ;;  %s396_s25 = scalar_lea.vmem %s1604_s2, %s1499_s20  ;;  %s403_s16 = scalar_lea.vmem %s1611_s9, %s1499_s20 }
  0x10   : > { %1258 = vmatprep.mubr.msk.bf16.mxu1 %vm1402_vm0, %v1401_v2  ;;  %483 = vrot.lane.b32.xlu1 %v1200_v3, %s1400_s15  ;;  %v408_v5 = vpack.c.bf16 %v405_v4, %v405_v4  ;;  %v406_v7 = vld [vmem:[%s389_s26] sm:$0xff] }
  0x11   : > { %477 = vrot.lane.b32.xlu0 %v1355_v1, %s1400_s15  ;;  %v476_v9 = vpack.c.bf16 %v406_v7, %v406_v7 }
  0x12   : > { %1249 = vmatpush3.bf16.msra.mxu0 %v1355_v1 }
  0x13   : > { %1262 = vmatprep.subr.bf16.mxu0 %v1401_v2 }
  0x15   : > { %1251 = vmatmul.mubr.msk.bf16.vlgmr.msra.gmra.mxu0 %vm432_vm1, %v408_v5 }
  0x16   : > { %1264 = vmatprep.mubr.msk.bf16.mxu0 %vm1402_vm0, %v1401_v2 }
  0x7f   : > { %v480_v6 = vpop.permute.xlu0 %479 }
  0x80   : > { %1255 = vmatpush3.bf16.msra.mxu1 %v480_v6 }
  0x81   : > { %1256 = vmatprep.subr.bf16.mxu1 %v1401_v2 }
  0x82   : > { %v484_v16 = vpop.permute.xlu1 %483 }
  0x83   : > { %v478_v8 = vpop.permute.xlu0 %477 }
  0x84   : > { %1257 = vmatpush3.bf16.msra.mxu1 %v478_v8 }
  0x85   : > { %1268 = vmatprep.subr.bf16.mxu1 %v1401_v2 }
  0x87   : > { %1259 = vmatmul.mubr.msk.bf16.vlgmr.msra.gmra.mxu1 %vm432_vm1, %v476_v9 }
  0x88   : > { %1270 = vmatprep.mubr.msk.bf16.mxu1 %vm1402_vm0, %v1401_v2 }
  0xd5   : > { %v470_v10 = vpop.f32.mrf.mxu0 }
  0xd6   : > { %v471_v11 = vadd.f32 %v1200_v3, %v470_v10 }
  0xd7   : > { %v1252_v12 = vpop.f32.mrf.mxu0 }
  0xd8   : > { %v529_v13 = vpack.c.bf16 %v471_v11, %v471_v11 }
  0xd9   : > { %v473_v14 = vpop.f32.mrf.mxu0 }
  0xda   : > { %642 = vrot.lane.b32.xlu0 %v529_v13, %s1403_s27 }
  0xdb   : > { %v1253_v15 = vpop.f32.mrf.mxu0 }
  0xde   : > { %758 = vrot.lane.b32.xlu0 %v529_v13, %s1404_s28 }
  0xe2   : > { %874 = vrot.lane.b32.xlu0 %v529_v13, %s1405_s29 }
 0x147   : > { %v523_v17 = vpop.f32.mrf.mxu1 }
 0x148   : > { %v524_v18 = vadd.f32 %v523_v17, %v484_v16 }
 0x149   : > { %v1260_v19 = vpop.f32.mrf.mxu1 }
 0x14a   : > { %v530_v20 = vpack.c.bf16 %v524_v18, %v524_v18 }
 0x14b   : > { %v526_v21 = vpop.f32.mrf.mxu1 }
 0x14c   : > { %644 = vrot.lane.b32.xlu1 %v530_v20, %s1403_s27  ;;  %v536_v22 = vsel %vm531_vm2, %v530_v20, 0  ;;  %v643_v27 = vpop.permute.xlu0 %642 }
 0x14d   : > { %v1261_v23 = vpop.f32.mrf.mxu1  ;;  %1263 = vmatpush3.bf16.xpose.msra.mxu0 %v536_v22 }
 0x14e   : > { %1274 = vmatprep.subr.bf16.mxu0 %v1401_v2 }
 0x150   : > { %760 = vrot.lane.b32.xlu1 %v530_v20, %s1404_s28  ;;  %v759_v30 = vpop.permute.xlu0 %758 }
 0x154   : > { %876 = vrot.lane.b32.xlu1 %v530_v20, %s1405_s29  ;;  %1265 = vmatmul.mubr.msk.bf16.vlgmr.msra.gmra.mxu0 %vm531_vm2, %v529_v13  ;;  %v875_v32 = vpop.permute.xlu0 %874 }
 0x155   : > { %1276 = vmatprep.mubr.msk.bf16.mxu0 %vm1402_vm0, %v1401_v2 }
 0x1be   : > { %v645_v24 = vpop.permute.xlu1 %644 }
 0x1bf   : > { %v650_v25 = vsel %vm531_vm2, %v645_v24, 0 }
 0x1c0   : > { %1275 = vmatpush3.bf16.xpose.msra.mxu0 %v650_v25 }
 0x1c1   : > { %1286 = vmatprep.subr.bf16.mxu0 %v1401_v2 }
 0x1c2   : > { %v761_v26 = vpop.permute.xlu1 %760 }
 0x1c3   : > { %v766_v28 = vsel %vm531_vm2, %v761_v26, 0 }
 0x1c6   : > { %v877_v29 = vpop.permute.xlu1 %876 }
 0x1c7   : > { %1277 = vmatmul.mubr.msk.bf16.vlgmr.msra.gmra.mxu0 %vm531_vm2, %v643_v27  ;;  %v882_v31 = vsel %vm531_vm2, %v877_v29, 0 }
 0x1c8   : > { %1287 = vmatpush3.bf16.xpose.msra.mxu0 %v766_v28  ;;  %1288 = vmatprep.mubr.msk.bf16.mxu0 %vm1402_vm0, %v1401_v2 }
 0x1c9   : > { %1298 = vmatprep.subr.bf16.mxu0 %v1401_v2 }
 0x1cf   : > { %1289 = vmatmul.mubr.msk.bf16.vlgmr.msra.gmra.mxu0 %vm531_vm2, %v759_v30 }
 0x1d0   : > { %1299 = vmatpush3.bf16.xpose.msra.mxu0 %v882_v31  ;;  %1300 = vmatprep.mubr.msk.bf16.mxu0 %vm1402_vm0, %v1401_v2 }
 0x1d1   : > { %1310 = vmatprep.subr.bf16.mxu0 %v1401_v2 }
 0x1d7   : > { %1301 = vmatmul.mubr.msk.bf16.vlgmr.msra.gmra.mxu0 %vm531_vm2, %v875_v32 }
 0x1d8   : > { %1314 = vmatprep.mubr.msk.bf16.mxu0 %vm1402_vm0, %v1401_v2 }
 0x214   : > { %v572_v33 = vpop.f32.mrf.mxu0 }
 0x215   : > { %v578_v34 = vsel %vm531_vm2, %v572_v33, -inf }
 0x216   : > { %579 = vmax.xlane.f32.xlu1 %v578_v34  ;;  %v1266_v35 = vpop.f32.mrf.mxu0 }
 0x218   : > { %v575_v36 = vpop.f32.mrf.mxu0 }
 0x21a   : > { %v1267_v37 = vpop.f32.mrf.mxu0 }
 0x227   : > { %702 = vrot.lane.b32.xlu1 %v530_v20, %s1406_s30 }
 0x287   : > { %v686_v38 = vpop.f32.mrf.mxu0 }
 0x288   : > { %v692_v39 = vsel %vm531_vm2, %v686_v38, -inf }
 0x289   : > { %693 = vmax.xlane.f32.xlu0 %v692_v39  ;;  %v1278_v40 = vpop.f32.mrf.mxu0 }
 0x28b   : > { %v689_v41 = vpop.f32.mrf.mxu0 }
 0x28c   : > { %v1357_v41 = vld [vmem:[%s1607_s5] sm:$0xff]  }
 0x28d   : > { %v1279_v42 = vpop.f32.mrf.mxu0 }
 0x28f   : > { %v802_v43 = vpop.f32.mrf.mxu0 }
 0x290   : > { %v808_v44 = vsel %vm531_vm2, %v802_v43, -inf }
 0x291   : > { %809 = vmax.xlane.f32.xlu0 %v808_v44  ;;  %v1290_v45 = vpop.f32.mrf.mxu0 }
 0x293   : > { %v805_v46 = vpop.f32.mrf.mxu0 }
 0x295   : > { %v1291_v47 = vpop.f32.mrf.mxu0 }
 0x297   : > { %v918_v48 = vpop.f32.mrf.mxu0 }
 0x298   : > { %v924_v49 = vsel %vm531_vm2, %v918_v48, -inf }
 0x299   : > { %925 = vmax.xlane.f32.xlu1 %v924_v49  ;;  %v1302_v50 = vpop.f32.mrf.mxu0 }
 0x29b   : > { %v921_v51 = vpop.f32.mrf.mxu0 }
 0x29d   : > { %v1303_v52 = vpop.f32.mrf.mxu0 }
 0x29f   : > { %v580_v53 = vpop.xlane.xlu1 %579 }
 0x2a0   : > { %v581_v54 = vsub.f32 %v572_v33, %v580_v53 }
 0x2a2   : > { %v582_v55 = vmul.f32 1.442695, %v581_v54 }
 0x2a3   : > { %v703_v63 = vpop.permute.xlu1 %702 }
 0x2a4   : > { %1358 = vpow2.f32 %v582_v55  ;;  %v708_v5 = vsel %vm594_vm3, %v703_v63, 0 }
 0x2a7   : > { %589 = vrot.lane.b32.xlu0 %v530_v20, %s1400_s15  ;;  %s1409_s15 = smov 8  }
 0x2aa   : > { %818 = vrot.lane.b32.xlu1 %v530_v20, %s1407_s13 }
 0x2ab   : > { %934 = vrot.lane.b32.xlu0 %v530_v20, %s1408_s14 }
 0x2b1   : > { %v1359_v62 = vpop.eup %1358 }
 0x2b2   : > { %v587_v3 = vpack.c.bf16 %v1359_v62, %v1359_v62  ;;  %v584_v11 = vsel %vm531_vm2, %v1359_v62, 0.0 }
 0x312   : > { %v694_v56 = vpop.xlane.xlu0 %693 }
 0x313   : > { %v695_v57 = vsub.f32 %v686_v38, %v694_v56  ;;  %v1356_v38 = vld [vmem:[%s1607_s5 + $0x8] sm:$0xff]   ;;  %v1213_v56 = vld [vmem:[%s1608_s6] ss:$0 sm:$0xff] }
 0x314   : > { %1311 = vmatpush3.bf16.msra.mxu0 %v1356_v38 }
 0x315   : > { %v696_v58 = vmul.f32 1.442695, %v695_v57  ;;  %1312 = vmatprep.subr.bf16.mxu0 %v1401_v2 }
 0x317   : > { %1360 = vpow2.f32 %v696_v58  ;;  %v407_v58 = vld [vmem:[%s396_s25] sm:$0xff] }
 0x318   : > { %1313 = vmatpush3.bf16.msra.mxu0 %v1357_v41 }
 0x31a   : > { %v810_v59 = vpop.xlane.xlu0 %809 }
 0x31b   : > { %v811_v60 = vsub.f32 %v802_v43, %v810_v59 }
 0x31d   : > { %v812_v61 = vmul.f32 1.442695, %v811_v60 }
 0x31e   : > { %v590_v0 = vpop.permute.xlu0 %589 }
 0x31f   : > { %1362 = vpow2.f32 %v812_v61  ;;  %v596_v1 = vsel %vm594_vm3, %v590_v0, 0 }
 0x320   : > { %1269 = vmatpush3.bf16.msra.mxu1 %v596_v1 }
 0x321   : > { %1280 = vmatprep.subr.bf16.mxu1 %v1401_v2 }
 0x322   : > { %v926_v4 = vpop.xlane.xlu1 %925  ;;  %v935_v16 = vpop.permute.xlu0 %934 }
 0x323   : > { %v927_v6 = vsub.f32 %v918_v48, %v926_v4  ;;  %1271 = vmatmul.mubr.msk.bf16.vlgmr.msra.gmra.mxu1 %vm531_vm2, %v587_v3  ;;  %v940_v18 = vsel %vm594_vm3, %v935_v16, 0 }
 0x324   : > { %v1361_v7 = vpop.eup %1360  ;;  %1281 = vmatpush3.bf16.msra.mxu1 %v708_v5  ;;  %1282 = vmatprep.mubr.msk.bf16.mxu1 %vm1402_vm0, %v1401_v2 }
 0x325   : > { %v928_v8 = vmul.f32 1.442695, %v927_v6  ;;  %v698_v9 = vsel %vm531_vm2, %v1361_v7, 0.0  ;;  %1292 = vmatprep.subr.bf16.mxu1 %v1401_v2  ;;  %v701_v12 = vpack.c.bf16 %v1361_v7, %v1361_v7 }
 0x326   : > { %699 = vadd.xlane.f32.xlu1 %v698_v9  ;;  %v819_v10 = vpop.permute.xlu1 %818 }
 0x327   : > { %1364 = vpow2.f32 %v928_v8  ;;  %v824_v13 = vsel %vm594_vm3, %v819_v10, 0  ;;  %v1217_v10 = vld [vmem:[%s1609_s7] ss:$0 sm:$0xff] }
 0x32a   : > { %585 = vadd.xlane.f32.xlu1 %v584_v11 }
 0x32b   : > { %1283 = vmatmul.mubr.msk.bf16.vlgmr.msra.gmra.mxu1 %vm531_vm2, %v701_v12 }
 0x32c   : > { %v1363_v14 = vpop.eup %1362  ;;  %1293 = vmatpush3.bf16.msra.mxu1 %v824_v13  ;;  %1294 = vmatprep.mubr.msk.bf16.mxu1 %vm1402_vm0, %v1401_v2  ;;  %v1218_v13 = vld [vmem:[%s1610_s8] ss:$0 sm:$0xff] }
 0x32d   : > { %v814_v15 = vsel %vm531_vm2, %v1363_v14, 0.0  ;;  %1304 = vmatprep.subr.bf16.mxu1 %v1401_v2  ;;  %v817_v17 = vpack.c.bf16 %v1363_v14, %v1363_v14 }
 0x32e   : > { %815 = vadd.xlane.f32.xlu0 %v814_v15 }
 0x333   : > { %1295 = vmatmul.mubr.msk.bf16.vlgmr.msra.gmra.mxu1 %vm531_vm2, %v817_v17 }
 0x334   : > { %v1365_v19 = vpop.eup %1364  ;;  %1305 = vmatpush3.bf16.msra.mxu1 %v940_v18  ;;  %1306 = vmatprep.mubr.msk.bf16.mxu1 %vm1402_vm0, %v1401_v2 }
 0x335   : > { %v930_v20 = vsel %vm531_vm2, %v1365_v19, 0.0  ;;  %v933_v21 = vpack.c.bf16 %v1365_v19, %v1365_v19 }
 0x336   : > { %931 = vadd.xlane.f32.xlu0 %v930_v20 }
 0x33b   : > { %1307 = vmatmul.mubr.msk.bf16.vlgmr.msra.gmra.mxu1 %vm531_vm2, %v933_v21 }
 0x3af   : > { %v700_v22 = vpop.xlane.xlu1 %699 }
 0x3b3   : > { %v586_v23 = vpop.xlane.xlu1 %585 }
 0x3b4   : > { %1366 = vrcp.f32 %v586_v23 }
 0x3b5   : > { %1368 = vrcp.f32 %v700_v22 }
 0x3b7   : > { %v816_v25 = vpop.xlane.xlu0 %815 }
 0x3b8   : > { %1370 = vrcp.f32 %v816_v25 }
 0x3bf   : > { %v932_v32 = vpop.xlane.xlu0 %931 }
 0x3c0   : > { %1372 = vrcp.f32 %v932_v32 }
 0x3c1   : > { %v1367_v24 = vpop.eup %1366 }
 0x3c2   : > { %v1369_v31 = vpop.eup %1368 }
 0x3c5   : > { %v1371_v39 = vpop.eup %1370 }
 0x3cd   : > { %v1373_v46 = vpop.eup %1372 }
 0x3e3   : > { %v632_v26 = vpop.f32.mrf.mxu1 }
 0x3e4   : > { %v639_v27 = vmul.f32 %v1367_v24, %v632_v26 }
 0x3e5   : > { %v1272_v28 = vpop.f32.mrf.mxu1 }
 0x3e6   : > { %640 = vst.msk [vmem:[#allocation2] sm:$0xff] %vm531_vm2, %v639_v27 }
 0x3e7   : > { %v635_v29 = vpop.f32.mrf.mxu1 }
 0x3e9   : > { %v1273_v30 = vpop.f32.mrf.mxu1 }
 0x3eb   : > { %v744_v33 = vpop.f32.mrf.mxu1 }
 0x3ec   : > { %v751_v34 = vmul.f32 %v1369_v31, %v744_v33 }
 0x3ed   : > { %v1284_v35 = vpop.f32.mrf.mxu1 }
 0x3ee   : > { %753 = vrot.lane.b32.xlu0 %v751_v34, %s1409_s15 }
 0x3ef   : > { %v747_v36 = vpop.f32.mrf.mxu1 }
 0x3f1   : > { %v1285_v37 = vpop.f32.mrf.mxu1 }
 0x3f3   : > { %v860_v40 = vpop.f32.mrf.mxu1 }
 0x3f4   : > { %v867_v42 = vmul.f32 %v1371_v39, %v860_v40 }
 0x3f5   : > { %v1296_v43 = vpop.f32.mrf.mxu1 }
 0x3f6   : > { %869 = vrot.lane.b32.xlu1 %v867_v42, %s1410_s21 }
 0x3f7   : > { %v863_v44 = vpop.f32.mrf.mxu1 }
 0x3f9   : > { %v1297_v45 = vpop.f32.mrf.mxu1 }
 0x3fb   : > { %v976_v47 = vpop.f32.mrf.mxu1 }
 0x3fc   : > { %v983_v48 = vmul.f32 %v1373_v46, %v976_v47 }
 0x3fd   : > { %v1308_v49 = vpop.f32.mrf.mxu1 }
 0x3fe   : > { %985 = vrot.lane.b32.xlu1 %v983_v48, %s1411_s22 }
 0x3ff   : > { %v979_v50 = vpop.f32.mrf.mxu1 }
 0x401   : > { %v1309_v51 = vpop.f32.mrf.mxu1 }
 0x460   : > { %v754_v52 = vpop.permute.xlu0 %753 }
 0x461   : > { %757 = vst.msk [vmem:[#allocation2] sm:$0xff] %vm756_vm4, %v754_v52 }
 0x468   : > { %v870_v2 = vpop.permute.xlu1 %869 }
 0x469   : > { %873 = vst.msk [vmem:[#allocation2] sm:$0xff] %vm872_vm5, %v870_v2 }
 0x470   : > { %v986_v53 = vpop.permute.xlu1 %985 }
 0x471   : > { %989 = vst.msk [vmem:[#allocation2] sm:$0xff] %vm988_vm6, %v986_v53 }
 0x478   : > { %v990_v54 = vld [vmem:[#allocation2] sm:$0xff] }
 0x479   : > { %v991_v55 = vpack.c.bf16 %v990_v54, %v990_v54 }
 0x47b   : > { %1315 = vmatmul.mubr.msk.bf16.vlgmr.msra.gmra.mxu0 %vm432_vm1, %v991_v55 }
 0x53b   : > { %v1052_v57 = vpop.f32.mrf.mxu0 }
 0x53c   : > { %v1053_v59 = vadd.f32 %v1213_v56, %v1052_v57 }
 0x53d   : > { %v1316_v60 = vpop.f32.mrf.mxu0 }
 0x53e   : > { %v1058_v61 = vadd.f32 %v1053_v59, %v407_v58 }
 0x53f   : > { %v1055_v62 = vpop.f32.mrf.mxu0 }
 0x540   : > { %v1061_v63 = vsel %vm432_vm1, %v1058_v61, 0.0 }
 0x541   : > { %1062 = vadd.xlane.f32.xlu0 %v1061_v63  ;;  %v1317_v0 = vpop.f32.mrf.mxu0 }
 0x5ca   : > { %v1063_v1 = vpop.xlane.xlu0 %1062 }
 0x5cb   : > { %v1065_v3 = vmul.f32 0.03125, %v1063_v1 }
 0x5cd   : > { %v1066_v4 = vsub.f32 %v1058_v61, %v1065_v3 }
 0x5cf   : > { %v1067_v5 = vmul.f32 %v1066_v4, %v1066_v4  ;;  %v1078_v11 = vmul.f32 %v1217_v10, %v1066_v4 }
 0x5d1   : > { %v1068_v6 = vsel %vm432_vm1, %v1067_v5, 0.0 }
 0x5d2   : > { %1069 = vadd.xlane.f32.xlu1 %v1068_v6 }
 0x65b   : > { %v1070_v7 = vpop.xlane.xlu1 %1069 }
 0x65c   : > { %v1071_v8 = vmul.f32 0.03125, %v1070_v7 }
 0x65e   : > { %v1079_v9 = vadd.f32 1e-12, %v1071_v8 }
 0x660   : > { %1374 = vrsqrt.f32 %v1079_v9 }
 0x66d   : > { %v1375_v12 = vpop.eup %1374 }
 0x66e   : > { %v1081_v14 = vmul.f32 %v1375_v12, %v1078_v11 }
 0x670   : > { %v1088_v15 = vadd.f32 %v1218_v13, %v1081_v14 }
 0x672   : > { %1089 = vst.msk [vmem:[%s403_s16] sm:$0xff] %vm432_vm1, %v1088_v15 }
 0x673 PF: > { %s19_s11 = sadd.s32 1, %s1398_s11   ;;  %s1612_s30 = smov %s1394_s10 }
 0x674   : > { %p16_p5 = scmp.ge.s32.totalorder %s19_s11, 4   ;;  %s1613_s10 = smov %s1615_s12 }
 0x676   :  { %18 = sbr.rel (!%p16_p5) target bundleno = 2 (0x2), region = 92 }

// kernel: decoder_layer.3
= control target key start
LH: loop header
LB: loop body
LE: loop exit
PB: predicated region body
PF: predicated region fallthrough
CT: control target
= control target key end

     0   :  { %13 = vsyncpa [#allocation4], 0  ;;  %s1871_s0 = inlined_call_operand.vmem [shape: f32[2,8,32], index: 0, kind: input, shape index: {}, may-alias: {0,1}]   ;;  %s1872_s1 = inlined_call_operand.vmem [shape: f32[2,8,32], index: 1, kind: input, shape index: {}, may-alias: {0,1}]   ;;  %s1873_s2 = inlined_call_operand.vmem [shape: bf16[32,96], index: 2, kind: input, shape index: {}]   ;;  %s1874_s3 = inlined_call_operand.hbm [shape: f32[1,96], index: 3, kind: input, shape index: {}]   ;;  %s1875_s4 = inlined_call_operand.hbm [shape: bf16[32,32], index: 4, kind: input, shape index: {}]   ;;  %s1876_s5 = inlined_call_operand.hbm [shape: f32[1,32], index: 5, kind: input, shape index: {}]   ;;  %s1877_s6 = inlined_call_operand.hbm [shape: f32[1,32], index: 6, kind: input, shape index: {}]   ;;  %s1878_s7 = inlined_call_operand.hbm [shape: f32[1,32], index: 7, kind: input, shape index: {}]   ;;  %s1879_s8 = inlined_call_operand.vmem [shape: f32[2,8,32], index: 8, kind: output, shape index: {}]  }
   0x1   :  { %14 = vsyncpa [#allocation6], 0 }
   0x2   :  { %15 = vsyncpa [#allocation9], 0  ;;  %s1668_s27 = smov 0   ;;  %s1670_s28 = smov 0  }
   0x3   :  { %s1672_s29 = smov 0  }
   0x4 LB: > { %s1600_s30 = smov [#allocation5]   ;;  %s1195_s10 = sadd.s32 4294967295, %s1598_s29   ;;  %s1598_s29 = sphi %s1672_s29, %s21_s29   ;;  %s1594_s28 = sphi %s1670_s28, %s1888_s28   ;;  %s1590_s27 = sphi %s1668_s27, %s1887_s27  }
   0x5   : > { %s272_s9 = sshll.u32 %s1600_s30, 4  ;;  %p1197_p0 = scmp.ge.s32.totalorder %s1598_s29, 1  ;;  %s273_s9 = int_to_ptr.vmem [resolvable:$true] %s272_s9 }
   0x6   : > { %p246_p1 = scmp.lt.s32.totalorder %s1598_s29, 3  ;;  %p1686_p2 = scmp.eq.s32.totalorder %s1195_s10, 0 }
   0x7   : > { %s1601_s13 = smov [#allocation8]   ;;  %s33_s16 = sadd.s32 1, %s1594_s28 }
   0x8   : > { %s1882_s11 = scalar_select %p1686_p2, 1, 0 }
   0x9   : > { %p1690_p3 = pnand %p1197_p0, %p246_p1  ;;  %s297_s14 = sshll.u32 %s1601_s13, 4  ;;  %s298_s14 = int_to_ptr.vmem [resolvable:$true] %s297_s14 }
   0xa   : > { %s1445_s18 = scalar_lea.vmem %s273_s9, 256  ;;  %p1453_p10 = scmp.lt.s32.totalorder %s273_s9, %s273_s9 }
   0xb   : > { %p1339_p4 = pneg %p1690_p3  ;;  %p1446_p7 = scmp.ne.s32.totalorder %s273_s9, %s1445_s18 }
   0xc   : > { %p1454_p11 = scmp.lt.s32.totalorder %s1445_s18, %s1445_s18 }
   0xd   : > { %p1698_p5 = pnand %p1686_p2, %p1339_p4 }
   0xe   : > { %p1455_p12 = por %p1454_p11, %p1453_p10 }
   0xf   : > { %p1705_p6 = pneg %p1698_p5 }
  0x11   : > { %p1448_p8 = pnand %p1446_p7, %p1705_p6 }
  0x13   : > { %p1449_p9 = pneg %p1448_p8 }
  0x15   : > { %p1456_p13 = pnand %p1455_p12, %p1449_p9 }
  0x17   : > { %1459 = shalt.err (!%p1456_p13)
}
  0x18   : > { %s1602_s19 = smov 64   ;;  %s1603_s20 = smov 4  }
  0x19   : > { %1345 = dma.hbm_to_vmem [thread:$0]  (!%p1698_p5), %s1875_s4, 256, %s273_s9, [#allocation6], %s1602_s19, %s1602_s19, %s1603_s20  }
  0x1a   : > { %s1471_s23 = scalar_lea.vmem %s298_s14, 16  ;;  %s1478_s24 = scalar_lea.vmem %s298_s14, 32 }
  0x1b   : > { %p1472_p0 = scmp.ne.s32.totalorder %s298_s14, %s1471_s23  ;;  %p1479_p7 = scmp.lt.s32.totalorder %s298_s14, %s298_s14 }
  0x1c   : > { %p1480_p8 = scmp.lt.s32.totalorder %s1478_s24, %s1471_s23 }
  0x1d   : > { %p1474_p1 = pnand %p1472_p0, %p1705_p6 }
  0x1e   : > { %p1481_p10 = por %p1480_p8, %p1479_p7 }
  0x1f   : > { %p1475_p4 = pneg %p1474_p1 }
  0x21   : > { %p1482_p9 = pnand %p1481_p10, %p1475_p4 }
  0x23   : > { %1485 = shalt.err (!%p1482_p9)
}
  0x24   : > { %1351 = dma.hbm_to_vmem [thread:$0]  (!%p1698_p5), %s1877_s6, 16, %s298_s14, [#allocation9]  }
  0x25   : > { %p35_p11 = scmp.ge.s32.totalorder %s33_s16, 2  ;;  %s1604_s30 = smov [#allocation3]  }
  0x26   : > { %s262_s9 = sshll.u32 %s1604_s30, 4  ;;  %s1605_s10 = smov [#allocation7]   ;;  %s263_s9 = int_to_ptr.vmem [resolvable:$true] %s262_s9 }
  0x27   : > { %s1890_s16 = smov (%p35_p11, %s33_s16), 0  ;;  %s286_s13 = sshll.u32 %s1605_s10, 4  ;;  %s287_s13 = int_to_ptr.vmem [resolvable:$true] %s286_s13 }
  0x28   : > { %s1497_s18 = scalar_lea.vmem %s263_s9, 16  ;;  %s1504_s19 = scalar_lea.vmem %s263_s9, 32 }
  0x29   : > { %p1498_p12 = scmp.ne.s32.totalorder %s263_s9, %s1497_s18  ;;  %p1505_p1 = scmp.lt.s32.totalorder %s263_s9, %s263_s9 }
  0x2a   : > { %p1506_p4 = scmp.lt.s32.totalorder %s1504_s19, %s1497_s18 }
  0x2b   : > { %p1500_p13 = pnand %p1498_p12, %p1705_p6 }
  0x2c   : > { %p1507_p7 = por %p1506_p4, %p1505_p1 }
  0x2d   : > { %p1501_p0 = pneg %p1500_p13 }
  0x2f   : > { %p1508_p8 = pnand %p1507_p7, %p1501_p0 }
  0x31   : > { %1511 = shalt.err (!%p1508_p8)
}
  0x32   : > { %1342 = dma.hbm_to_vmem [thread:$0]  (!%p1698_p5), %s1874_s3, 16, %s263_s9, [#allocation4]  }
  0x33   : > { %s1523_s21 = scalar_lea.vmem %s287_s13, 16  ;;  %s1530_s22 = scalar_lea.vmem %s287_s13, 32 }
  0x34   : > { %p1524_p10 = scmp.ne.s32.totalorder %s287_s13, %s1523_s21  ;;  %p1531_p12 = scmp.lt.s32.totalorder %s287_s13, %s287_s13 }
  0x35   : > { %p1532_p13 = scmp.lt.s32.totalorder %s1530_s22, %s1523_s21 }
  0x36   : > { %p1526_p9 = pnand %p1524_p10, %p1705_p6 }
  0x37   : > { %p1533_p2 = por %p1532_p13, %p1531_p12 }
  0x38   : > { %p1527_p11 = pneg %p1526_p9 }
  0x3a   : > { %p1534_p1 = pnand %p1533_p2, %p1527_p11 }
  0x3c   : > { %1537 = shalt.err (!%p1534_p1)
}
  0x3d   : > { %1348 = dma.hbm_to_vmem [thread:$0]  (!%p1698_p5), %s1876_s5, 16, %s287_s13, [#allocation6]  }
  0x3e   : > { %s1606_s25 = smov [#allocation10]  }
  0x3f   : > { %s308_s26 = sshll.u32 %s1606_s25, 4  ;;  %s309_s26 = int_to_ptr.vmem [resolvable:$true] %s308_s26 }
  0x40   : > { %s1549_s30 = scalar_lea.vmem %s309_s26, 16  ;;  %s1556_s9 = scalar_lea.vmem %s309_s26, 32 }
  0x41   : > { %p1550_p0 = scmp.ne.s32.totalorder %s309_s26, %s1549_s30  ;;  %p1557_p8 = scmp.lt.s32.totalorder %s309_s26, %s309_s26 }
  0x42   : > { %p1558_p10 = scmp.lt.s32.totalorder %s1556_s9, %s1549_s30 }
  0x43   : > { %p1552_p4 = pnand %p1550_p0, %p1705_p6 }
  0x44   : > { %p1559_p2 = por %p1558_p10, %p1557_p8 }
  0x45   : > { %p1553_p7 = pneg %p1552_p4 }
  0x47   : > { %p1560_p9 = pnand %p1559_p2, %p1553_p7 }
  0x49   : > { %1563 = shalt.err (!%p1560_p9)
}
  0x4a   : > { %1354 = dma.hbm_to_vmem [thread:$0]  (!%p1698_p5), %s1878_s7, 16, %s309_s26, [#allocation9]  }
  0x4b   : > { %338 = sbr.rel (%p1690_p3) target bundleno = 1645 (0x66d), region = 52  ;;  %p1886_p11 = scmp.ne.s32.totalorder (!%p1690_p3), %s1882_s11, 0 }
  0x50   : > { %1577 = dma.done.wait (%p1886_p11), [#allocation4], 16  }
  0x51   : > { %1579 = vsyncadd (%p1886_p11), [#allocation4], 4294967280 }
  0x52   : > { %1581 = dma.done.wait (%p1886_p11), [#allocation6], 272  }
  0x53   : > { %1583 = vsyncadd (%p1886_p11), [#allocation6], 4294967024 }
  0x54   : > { %1585 = dma.done.wait (%p1886_p11), [#allocation9], 32  }
  0x55   : > { %1587 = vsyncadd (%p1886_p11), [#allocation9], 4294967264  ;;  %p396_p3 = scmp.lt.s32.totalorder %s1590_s27, 1  ;;  %v1607_v0 = vmov 0.0   ;;  %vm1608_vm0 = vmmov 0   ;;  %v1412_v1 = vld [vmem:[%s1873_s2 + $0x8] sm:$0xff]   ;;  %v487_v23 = vlaneseq }
  0x56   : > { %1255 = vmatprep.subr.bf16.mxu0 %v1607_v0  ;;  %1259 = vmatprep.mubr.msk.bf16.mxu0 %vm1608_vm0, %v1607_v0  ;;  %v1413_v2 = vld [vmem:[%s1873_s2] sm:$0xff]   ;;  %vm441_vm1 = vcmask 261120   ;;  %v1213_v5 = vld [vmem:[#allocation3] ss:$0 sm:$0xff]  ;;  %s1610_s21 = smov 96   ;;  %s1611_s22 = smov 80  }
  0x57   : > { %s1892_s27 = smov (!%p396_p3, %s1590_s27), 1  ;;  %1263 = vmatprep.subr.bf16.mxu1 %v1607_v0  ;;  %1265 = vmatprep.mubr.msk.bf16.mxu1 %vm1608_vm0, %v1607_v0  ;;  %s1612_s23 = smov 88   ;;  %vm497_vm2 = vcmask 64512   ;;  %v488_v24 = vshrl.u32 %v487_v23, 7  ;;  %v492_v25 = vand.u32 127, %v487_v23  ;;  %vm560_vm4 = vcmask 1043456  }
  0x58   : > { %s1768_s12 = sshll.u32 %s1892_s27, 3  ;;  %1256 = vmatpush3.bf16.msra.mxu0 %v1412_v1  ;;  %s1609_s27 = smov 120   ;;  %vm722_vm5 = vcmask 130112   ;;  %vm839_vm6 = vcmask 195712   ;;  %vm956_vm7 = vcmask 261312  }
  0x59   : > { %s406_s17 = scalar_lea.vmem %s1872_s1, %s1768_s12  ;;  %1257 = vmatprep.subr.bf16.mxu0 %v1607_v0  ;;  %s1613_s24 = smov 72   ;;  %vm493_vm3 = vcmp.gt.s32.totalorder %v492_v25, %v488_v24 }
  0x5a   : > { %v415_v3 = vld [vmem:[%s406_s17] sm:$0xff]  ;;  %s1614_s25 = smov 112   ;;  %s1615_s26 = smov 104  }
  0x5b   : > { %v417_v4 = vpack.c.bf16 %v415_v3, %v415_v3  ;;  %s1616_s30 = smov 56   ;;  %s1617_s9 = smov 64  }
  0x5c   : > { %1258 = vmatpush3.bf16.msra.mxu0 %v1413_v2  ;;  %s1618_s10 = smov 40   ;;  %s1619_s18 = smov 48  }
  0x5d   : > { %1269 = vmatprep.subr.bf16.mxu0 %v1607_v0  ;;  %s1620_s11 = smov 8   ;;  %s1621_s15 = smov 16  }
  0x5e   : > { %s1622_s17 = smov 24   ;;  %s402_s14 = scalar_lea.vmem %s1871_s0, %s1768_s12 }
  0x5f   : > { %1260 = vmatmul.mubr.msk.bf16.vlgmr.msra.gmra.mxu0 %vm441_vm1, %v417_v4 }
  0x60   : > { %1271 = vmatprep.mubr.msk.bf16.mxu0 %vm1608_vm0, %v1607_v0 }
 0x11f   : > { %v479_v6 = vpop.f32.mrf.mxu0 }
 0x120   : > { %v480_v7 = vadd.f32 %v1213_v5, %v479_v6 }
 0x121   : > { %v1261_v8 = vpop.f32.mrf.mxu0 }
 0x122   : > { %v1785_v9 = vpack.c.bf16 %v480_v7, %v480_v7 }
 0x123   : > { %v482_v10 = vpop.f32.mrf.mxu0 }
 0x124   : > { %607 = vrot.lane.b32.xlu1 %v1785_v9, %s1609_s27  ;;  %495 = vrot.lane.b32.xlu0 %v1785_v9, %s1610_s21  ;;  %s413_s21 = scalar_lea.vmem %s1879_s8, %s1768_s12 }
 0x125   : > { %v1262_v11 = vpop.f32.mrf.mxu0 }
 0x128   : > { %726 = vrot.lane.b32.xlu1 %v1785_v9, %s1611_s22  ;;  %609 = vrot.lane.b32.xlu0 %v1785_v9, %s1612_s23 }
 0x12c   : > { %843 = vrot.lane.b32.xlu1 %v1785_v9, %s1613_s24  ;;  %724 = vrot.lane.b32.xlu0 %v1785_v9, %s1614_s25 }
 0x130   : > { %841 = vrot.lane.b32.xlu0 %v1785_v9, %s1615_s26 }
 0x196   : > { %v496_v12 = vpop.permute.xlu0 %495  ;;  %v608_v15 = vpop.permute.xlu1 %607 }
 0x197   : > { %v502_v13 = vsel %vm497_vm2, %v496_v12, 0 }
 0x198   : > { %1264 = vmatpush3.bf16.xpose.msra.mxu1 %v502_v13 }
 0x199   : > { %1275 = vmatprep.subr.bf16.mxu1 %v1607_v0 }
 0x19a   : > { %v610_v14 = vpop.permute.xlu0 %609  ;;  %v727_v17 = vpop.permute.xlu1 %726 }
 0x19b   : > { %v615_v16 = vsel %vm497_vm2, %v610_v14, 0  ;;  %v732_v18 = vsel %vm497_vm2, %v727_v17, 0 }
 0x19e   : > { %v844_v19 = vpop.permute.xlu1 %843  ;;  %v725_v20 = vpop.permute.xlu0 %724 }
 0x19f   : > { %1266 = vmatmul.mubr.msk.bf16.vlgmr.msra.gmra.mxu1 %vm497_vm2, %v1785_v9  ;;  %v849_v21 = vsel %vm497_vm2, %v844_v19, 0 }
 0x1a0   : > { %1276 = vmatpush3.bf16.xpose.msra.mxu1 %v615_v16  ;;  %1277 = vmatprep.mubr.msk.bf16.mxu1 %vm1608_vm0, %v1607_v0 }
 0x1a1   : > { %1287 = vmatprep.subr.bf16.mxu1 %v1607_v0 }
 0x1a2   : > { %v842_v22 = vpop.permute.xlu0 %841 }
 0x1a7   : > { %1278 = vmatmul.mubr.msk.bf16.vlgmr.msra.gmra.mxu1 %vm497_vm2, %v608_v15 }
 0x1a8   : > { %1288 = vmatpush3.bf16.xpose.msra.mxu1 %v732_v18  ;;  %1289 = vmatprep.mubr.msk.bf16.mxu1 %vm1608_vm0, %v1607_v0 }
 0x1a9   : > { %1299 = vmatprep.subr.bf16.mxu1 %v1607_v0 }
 0x1af   : > { %1290 = vmatmul.mubr.msk.bf16.vlgmr.msra.gmra.mxu1 %vm497_vm2, %v725_v20 }
 0x1b0   : > { %1300 = vmatpush3.bf16.xpose.msra.mxu1 %v849_v21  ;;  %1301 = vmatprep.mubr.msk.bf16.mxu1 %vm1608_vm0, %v1607_v0 }
 0x1b1   : > { %1311 = vmatprep.subr.bf16.mxu1 %v1607_v0 }
 0x1b7   : > { %1302 = vmatmul.mubr.msk.bf16.vlgmr.msra.gmra.mxu1 %vm497_vm2, %v842_v22 }
 0x1b8   : > { %1315 = vmatprep.mubr.msk.bf16.mxu1 %vm1608_vm0, %v1607_v0 }
 0x25f   : > { %v538_v26 = vpop.f32.mrf.mxu1 }
 0x260   : > { %v544_v27 = vsel %vm493_vm3, -10000.0, %v538_v26 }
 0x261   : > { %v1267_v28 = vpop.f32.mrf.mxu1  ;;  %v545_v29 = vsel %vm497_vm2, %v544_v27, -inf }
 0x262   : > { %546 = vmax.xlane.f32.xlu1 %v545_v29 }
 0x263   : > { %v541_v30 = vpop.f32.mrf.mxu1 }
 0x265   : > { %v1268_v31 = vpop.f32.mrf.mxu1 }
 0x267   : > { %v651_v32 = vpop.f32.mrf.mxu1 }
 0x268   : > { %v657_v33 = vsel %vm493_vm3, -10000.0, %v651_v32 }
 0x269   : > { %v1279_v34 = vpop.f32.mrf.mxu1  ;;  %v658_v35 = vsel %vm497_vm2, %v657_v33, -inf }
 0x26a   : > { %659 = vmax.xlane.f32.xlu0 %v658_v35 }
 0x26b   : > { %v654_v36 = vpop.f32.mrf.mxu1 }
 0x26d   : > { %v1280_v37 = vpop.f32.mrf.mxu1 }
 0x26f   : > { %v768_v38 = vpop.f32.mrf.mxu1 }
 0x270   : > { %v774_v39 = vsel %vm493_vm3, -10000.0, %v768_v38 }
 0x271   : > { %v1291_v40 = vpop.f32.mrf.mxu1  ;;  %v775_v41 = vsel %vm497_vm2, %v774_v39, -inf }
 0x272   : > { %776 = vmax.xlane.f32.xlu0 %v775_v41  ;;  %v1415_v41 = vld [vmem:[#allocation5] sm:$0xff]  }
 0x273   : > { %668 = vrot.lane.b32.xlu1 %v1785_v9, %s1616_s30  ;;  %v771_v42 = vpop.f32.mrf.mxu1 }
 0x275   : > { %v1292_v43 = vpop.f32.mrf.mxu1 }
 0x277   : > { %v885_v44 = vpop.f32.mrf.mxu1 }
 0x278   : > { %v891_v48 = vsel %vm493_vm3, -10000.0, %v885_v44 }
 0x279   : > { %v1303_v45 = vpop.f32.mrf.mxu1  ;;  %v892_v49 = vsel %vm497_vm2, %v891_v48, -inf }
 0x27b   : > { %v888_v46 = vpop.f32.mrf.mxu1 }
 0x27d   : > { %v1304_v47 = vpop.f32.mrf.mxu1 }
 0x288   : > { %555 = vrot.lane.b32.xlu0 %v1785_v9, %s1617_s9 }
 0x28c   : > { %902 = vrot.lane.b32.xlu0 %v1785_v9, %s1618_s10 }
 0x297   : > { %893 = vmax.xlane.f32.xlu1 %v892_v49 }
 0x2a8   : > { %785 = vrot.lane.b32.xlu1 %v1785_v9, %s1619_s18 }
 0x2eb   : > { %v547_v50 = vpop.xlane.xlu1 %546 }
 0x2ec   : > { %v548_v51 = vsub.f32 %v544_v27, %v547_v50 }
 0x2ee   : > { %v549_v52 = vmul.f32 1.442695, %v548_v51 }
 0x2ef   : > { %v669_v62 = vpop.permute.xlu1 %668 }
 0x2f0   : > { %1416 = vpow2.f32 %v549_v52  ;;  %v674_v1 = vsel %vm560_vm4, %v669_v62, 0 }
 0x2f3   : > { %v660_v53 = vpop.xlane.xlu0 %659 }
 0x2f4   : > { %v661_v54 = vsub.f32 %v657_v33, %v660_v53  ;;  %v1225_v53 = vld [vmem:[#allocation7] ss:$0 sm:$0xff] }
 0x2f6   : > { %v662_v55 = vmul.f32 1.442695, %v661_v54 }
 0x2f8   : > { %1418 = vpow2.f32 %v662_v55  ;;  %v416_v55 = vld [vmem:[%s402_s14] sm:$0xff] }
 0x2fb   : > { %v777_v56 = vpop.xlane.xlu0 %776 }
 0x2fc   : > { %v778_v57 = vsub.f32 %v774_v39, %v777_v56  ;;  %v1414_v39 = vld [vmem:[#allocation5 + $0x8] sm:$0xff]  }
 0x2fd   : > { %v1417_v59 = vpop.eup %1416  ;;  %1312 = vmatpush3.bf16.msra.mxu1 %v1414_v39 }
 0x2fe   : > { %v779_v58 = vmul.f32 1.442695, %v778_v57  ;;  %v554_v63 = vpack.c.bf16 %v1417_v59, %v1417_v59  ;;  %v551_v4 = vsel %vm497_vm2, %v1417_v59, 0.0  ;;  %1313 = vmatprep.subr.bf16.mxu1 %v1607_v0 }
 0x2ff   : > { %v556_v60 = vpop.permute.xlu0 %555 }
 0x300   : > { %1420 = vpow2.f32 %v779_v58  ;;  %v562_v61 = vsel %vm560_vm4, %v556_v60, 0 }
 0x301   : > { %1270 = vmatpush3.bf16.msra.mxu0 %v562_v61  ;;  %1314 = vmatpush3.bf16.msra.mxu1 %v1415_v41 }
 0x302   : > { %1281 = vmatprep.subr.bf16.mxu0 %v1607_v0 }
 0x303   : > { %v903_v13 = vpop.permute.xlu0 %902 }
 0x304   : > { %1272 = vmatmul.mubr.msk.bf16.vlgmr.msra.gmra.mxu0 %vm497_vm2, %v554_v63  ;;  %v908_v15 = vsel %vm560_vm4, %v903_v13, 0 }
 0x305   : > { %v1419_v2 = vpop.eup %1418  ;;  %1282 = vmatpush3.bf16.msra.mxu0 %v674_v1  ;;  %1283 = vmatprep.mubr.msk.bf16.mxu0 %vm1608_vm0, %v1607_v0 }
 0x306   : > { %v664_v3 = vsel %vm497_vm2, %v1419_v2, 0.0  ;;  %1293 = vmatprep.subr.bf16.mxu0 %v1607_v0  ;;  %v667_v5 = vpack.c.bf16 %v1419_v2, %v1419_v2 }
 0x307   : > { %665 = vadd.xlane.f32.xlu1 %v664_v3 }
 0x30b   : > { %552 = vadd.xlane.f32.xlu1 %v551_v4 }
 0x30c   : > { %1284 = vmatmul.mubr.msk.bf16.vlgmr.msra.gmra.mxu0 %vm497_vm2, %v667_v5 }
 0x30d   : > { %v1421_v6 = vpop.eup %1420  ;;  %1295 = vmatprep.mubr.msk.bf16.mxu0 %vm1608_vm0, %v1607_v0 }
 0x30e   : > { %v781_v7 = vsel %vm497_vm2, %v1421_v6, 0.0  ;;  %v784_v14 = vpack.c.bf16 %v1421_v6, %v1421_v6 }
 0x30f   : > { %782 = vadd.xlane.f32.xlu0 %v781_v7  ;;  %v1229_v7 = vld [vmem:[#allocation8] ss:$0 sm:$0xff] }
 0x320   : > { %v894_v8 = vpop.xlane.xlu1 %893 }
 0x321   : > { %v895_v9 = vsub.f32 %v891_v48, %v894_v8 }
 0x323   : > { %v896_v10 = vmul.f32 1.442695, %v895_v9 }
 0x324   : > { %v786_v11 = vpop.permute.xlu1 %785 }
 0x325   : > { %1422 = vpow2.f32 %v896_v10  ;;  %v791_v12 = vsel %vm560_vm4, %v786_v11, 0  ;;  %v1230_v10 = vld [vmem:[#allocation10] ss:$0 sm:$0xff] }
 0x326   : > { %1294 = vmatpush3.bf16.msra.mxu0 %v791_v12 }
 0x327   : > { %1305 = vmatprep.subr.bf16.mxu0 %v1607_v0 }
 0x329   : > { %1296 = vmatmul.mubr.msk.bf16.vlgmr.msra.gmra.mxu0 %vm497_vm2, %v784_v14 }
 0x32a   : > { %1306 = vmatpush3.bf16.msra.mxu0 %v908_v15  ;;  %1307 = vmatprep.mubr.msk.bf16.mxu0 %vm1608_vm0, %v1607_v0 }
 0x332   : > { %v1423_v16 = vpop.eup %1422 }
 0x333   : > { %v898_v17 = vsel %vm497_vm2, %v1423_v16, 0.0  ;;  %v901_v18 = vpack.c.bf16 %v1423_v16, %v1423_v16 }
 0x334   : > { %899 = vadd.xlane.f32.xlu0 %v898_v17 }
 0x335   : > { %1308 = vmatmul.mubr.msk.bf16.vlgmr.msra.gmra.mxu0 %vm497_vm2, %v901_v18 }
 0x390   : > { %v666_v19 = vpop.xlane.xlu1 %665 }
 0x394   : > { %v553_v20 = vpop.xlane.xlu1 %552 }
 0x395   : > { %1424 = vrcp.f32 %v553_v20 }
 0x396   : > { %1426 = vrcp.f32 %v666_v19 }
 0x398   : > { %v783_v33 = vpop.xlane.xlu0 %782 }
 0x399   : > { %1428 = vrcp.f32 %v783_v33 }
 0x3a2   : > { %v1425_v21 = vpop.eup %1424 }
 0x3a3   : > { %v1427_v27 = vpop.eup %1426 }
 0x3a6   : > { %v1429_v35 = vpop.eup %1428 }
 0x3bd   : > { %v900_v34 = vpop.xlane.xlu0 %899 }
 0x3be   : > { %1430 = vrcp.f32 %v900_v34 }
 0x3c4   : > { %v598_v22 = vpop.f32.mrf.mxu0 }
 0x3c5   : > { %v605_v23 = vmul.f32 %v1425_v21, %v598_v22 }
 0x3c6   : > { %v1273_v24 = vpop.f32.mrf.mxu0 }
 0x3c7   : > { %606 = vst.msk [vmem:[#allocation2] sm:$0xff] %vm497_vm2, %v605_v23 }
 0x3c8   : > { %v601_v25 = vpop.f32.mrf.mxu0 }
 0x3ca   : > { %v1274_v26 = vpop.f32.mrf.mxu0 }
 0x3cb   : > { %v1431_v43 = vpop.eup %1430 }
 0x3cc   : > { %v710_v28 = vpop.f32.mrf.mxu0 }
 0x3cd   : > { %v717_v29 = vmul.f32 %v1427_v27, %v710_v28 }
 0x3ce   : > { %v1285_v30 = vpop.f32.mrf.mxu0 }
 0x3cf   : > { %719 = vrot.lane.b32.xlu0 %v717_v29, %s1620_s11 }
 0x3d0   : > { %v713_v31 = vpop.f32.mrf.mxu0 }
 0x3d2   : > { %v1286_v32 = vpop.f32.mrf.mxu0 }
 0x3e9   : > { %v827_v36 = vpop.f32.mrf.mxu0 }
 0x3ea   : > { %v834_v37 = vmul.f32 %v1429_v35, %v827_v36 }
 0x3eb   : > { %v1297_v38 = vpop.f32.mrf.mxu0 }
 0x3ec   : > { %836 = vrot.lane.b32.xlu1 %v834_v37, %s1621_s15 }
 0x3ed   : > { %v830_v40 = vpop.f32.mrf.mxu0 }
 0x3ef   : > { %v1298_v42 = vpop.f32.mrf.mxu0 }
 0x3f5   : > { %v944_v44 = vpop.f32.mrf.mxu0 }
 0x3f6   : > { %v951_v45 = vmul.f32 %v1431_v43, %v944_v44 }
 0x3f7   : > { %v1309_v46 = vpop.f32.mrf.mxu0 }
 0x3f8   : > { %953 = vrot.lane.b32.xlu1 %v951_v45, %s1622_s17 }
 0x3f9   : > { %v947_v47 = vpop.f32.mrf.mxu0 }
 0x3fb   : > { %v1310_v48 = vpop.f32.mrf.mxu0 }
 0x441   : > { %v720_v49 = vpop.permute.xlu0 %719 }
 0x442   : > { %723 = vst.msk [vmem:[#allocation2] sm:$0xff] %vm722_vm5, %v720_v49 }
 0x45e   : > { %v837_v50 = vpop.permute.xlu1 %836 }
 0x45f   : > { %840 = vst.msk [vmem:[#allocation2] sm:$0xff] %vm839_vm6, %v837_v50 }
 0x46a   : > { %v954_v51 = vpop.permute.xlu1 %953 }
 0x46b   : > { %957 = vst.msk [vmem:[#allocation2] sm:$0xff] %vm956_vm7, %v954_v51 }
 0x472   : > { %v958_v0 = vld [vmem:[#allocation2] sm:$0xff] }
 0x473   : > { %v959_v52 = vpack.c.bf16 %v958_v0, %v958_v0 }
 0x475   : > { %1316 = vmatmul.mubr.msk.bf16.vlgmr.msra.gmra.mxu1 %vm441_vm1, %v959_v52 }
 0x535   : > { %v1020_v54 = vpop.f32.mrf.mxu1 }
 0x536   : > { %v1021_v56 = vadd.f32 %v1225_v53, %v1020_v54 }
 0x537   : > { %v1317_v57 = vpop.f32.mrf.mxu1 }
 0x538   : > { %v1026_v58 = vadd.f32 %v1021_v56, %v416_v55 }
 0x539   : > { %v1023_v59 = vpop.f32.mrf.mxu1 }
 0x53a   : > { %v1029_v60 = vsel %vm441_vm1, %v1026_v58, 0.0 }
 0x53b   : > { %1030 = vadd.xlane.f32.xlu0 %v1029_v60  ;;  %v1318_v61 = vpop.f32.mrf.mxu1 }
 0x5c4   : > { %v1031_v62 = vpop.xlane.xlu0 %1030 }
 0x5c5   : > { %v1033_v63 = vmul.f32 0.03125, %v1031_v62 }
 0x5c7   : > { %v1034_v1 = vsub.f32 %v1026_v58, %v1033_v63 }
 0x5c9   : > { %v1035_v2 = vmul.f32 %v1034_v1, %v1034_v1  ;;  %v1046_v8 = vmul.f32 %v1229_v7, %v1034_v1 }
 0x5cb   : > { %v1036_v3 = vsel %vm441_vm1, %v1035_v2, 0.0 }
 0x5cc   : > { %1037 = vadd.xlane.f32.xlu1 %v1036_v3 }
 0x655   : > { %v1038_v4 = vpop.xlane.xlu1 %1037 }
 0x656   : > { %v1039_v5 = vmul.f32 0.03125, %v1038_v4 }
 0x658   : > { %v1047_v6 = vadd.f32 1e-12, %v1039_v5 }
 0x65a   : > { %1432 = vrsqrt.f32 %v1047_v6 }
 0x667   : > { %v1433_v9 = vpop.eup %1432 }
 0x668   : > { %v1049_v11 = vmul.f32 %v1433_v9, %v1046_v8 }
 0x66a   : > { %v1056_v12 = vadd.f32 %v1230_v10, %v1049_v11 }
 0x66c   : > { %1057 = vst.msk [vmem:[%s413_s21] sm:$0xff] %vm441_vm1, %v1056_v12 }
 0x66d PF: > { %s21_s29 = sadd.s32 1, %s1598_s29   ;;  %s1887_s27 = smov %s1594_s28 }
 0x66e   : > { %p18_p5 = scmp.ge.s32.totalorder %s21_s29, 4   ;;  %s1888_s28 = smov %s1890_s16 }
 0x670   :  { %20 = sbr.rel (!%p18_p5) target bundleno = 4 (0x4), region = 106 }
 0x675   :  { %1083 = vsyncpa [#allocation4], 1 }
 0x676   :  { %1085 = vsyncpa [#allocation4 + $0x1], 1 }
 0x677   :  { %1086 = vsyncpa [#allocation6], 1 }
 0x678   :  { %1087 = vsyncpa [#allocation9], 1 }

</bundles_post_ra>
